<compile_context>
chip_gen: v7x
topology: tpu7x:2x2x1
jax: 0.10.0
libtpu: 0.0.40
codegen_flags: <defaults>
</compile_context>

<pallas_src>
import functools

import jax
import jax.numpy as jnp
from jax.experimental import pallas as pl
from jax.experimental.pallas import tpu as pltpu

HALO = 16  # halo rows per side; 16 keeps bf16 (16,128) sublane packing aligned.
           # The conv1->conv2 chain only actually needs 2 rows of halo per side.


def _conv_ln_relu(v, not_first, not_last, w_ref, b_ref, g_ref, be_ref, mxu_dtype):
    """Channels-last conv1d(k=3, pad=1 per sequence) + LayerNorm + ReLU.

    v: (R, Cin) in f32 or mxu_dtype; not_first/not_last: (R, 1) bool masks marking
    rows that have a valid predecessor/successor inside their own batch element.
    w_ref: (3, Cin, Cout); b/g/be: (1, Cout).  Returns (R, Cout) f32.
    """
    n = v.shape[0]
    # Shifted taps via XLU rotate + VPU select; no unaligned slice/concat copies.
    # Rolls/masks stay in f32 on purpose: sublane rotates of packed bf16 are a
    # Mosaic compile risk, and the extra casts are VALU filler under the
    # MXU/HBM-bound steady state (removing them would be perf-neutral).
    vf = v.astype(jnp.float32)
    vp = jnp.where(not_first, pltpu.roll(vf, shift=1, axis=0), 0.0)       # v[r-1]
    vn = jnp.where(not_last, pltpu.roll(vf, shift=n - 1, axis=0), 0.0)    # v[r+1]
    h = jnp.dot(vp.astype(mxu_dtype), w_ref[0], preferred_element_type=jnp.float32)
    h = h + jnp.dot(v.astype(mxu_dtype), w_ref[1], preferred_element_type=jnp.float32)
    h = h + jnp.dot(vn.astype(mxu_dtype), w_ref[2], preferred_element_type=jnp.float32)
    h = h + b_ref[...]
    # One-pass LayerNorm: var = E[h^2] - E[h]^2 (single sweep; the clamp guards
    # catastrophic cancellation; documented by the 2e-3 test tolerance).
    mu = jnp.mean(h, axis=-1, keepdims=True)
    var = jnp.maximum(jnp.mean(h * h, axis=-1, keepdims=True) - mu * mu, 0.0)
    h = (h - mu) * jax.lax.rsqrt(var + 1e-5) * g_ref[...] + be_ref[...]
    return jnp.maximum(h, 0.0)                    # ReLU; dropout = identity in eval


def energy_predictor_kernel(
    xc_ref, xp_ref, xn_ref,                  # (R, E), (HALO, E), (HALO, E) [mxu_dtype]
    w1_ref, b1_ref, g1_ref, be1_ref,         # (3, E, F), (1, F), (1, F), (1, F)
    w2_ref, b2_ref, g2_ref, be2_ref,         # (3, F, F), (1, F), (1, F), (1, F)
    wl_ref, bl_ref,                          # (1, F), (1, 1)
    emb_ref,                                 # (256, F) [mxu_dtype]
    dur_ref, emb_out_ref,                    # (R, 1) f32, (R, F) emb dtype
    *, seq_len, rows, gamma, mxu_dtype):
    i = pl.program_id(0)
    n_ext = rows + 2 * HALO

    # Extended row window [i*rows - HALO, i*rows + rows + HALO) of the folded
    # (B*T) axis; the halo rows supply the conv1->conv2 receptive field across
    # tile boundaries.  Halo garbage at the array ends is always masked by the
    # batch-boundary masks or falls in rows that are sliced off below.
    # TODO(synk): replace the concat with a single overlapping element-offset
    # fetch if the vst slot ever binds; with bf16 x the concat cost is halved.
    x_ext = jnp.concatenate([xp_ref[...], xc_ref[...], xn_ref[...]], axis=0)
    g = (i * rows - HALO) + jax.lax.broadcasted_iota(jnp.int32, (n_ext, 1), 0)
    pos = g % seq_len                         # row position inside its batch element
    not_first = pos != 0                      # conv zero-pad at sequence start
    not_last = pos != (seq_len - 1)           # conv zero-pad at sequence end

    h = _conv_ln_relu(x_ext, not_first, not_last, w1_ref, b1_ref, g1_ref, be1_ref, mxu_dtype)
    h = _conv_ln_relu(h, not_first, not_last, w2_ref, b2_ref, g2_ref, be2_ref, mxu_dtype)
    h = h[HALO:HALO + rows, :]                # drop halo rows (16-aligned static slice)

    # Linear(F, 1) + ReLU as a VPU multiply + lane reduction (no N=1 MXU matmul).
    d = jnp.sum(h * wl_ref[...], axis=-1, keepdims=True) + bl_ref[...]
    d = jnp.maximum(d, 0.0)                   # (rows, 1)
    dur_ref[...] = d
    # TODO(synk): dur is a 1-lane-wide store (masked vst + thin DMA); a lane-dense
    # (rows//128, 128) relayout would fix it, but Mosaic reshape support across the
    # lane boundary isn't guaranteed and dur is <1% of the HBM traffic.

    # energy_target is None path: bucket index -> embedding row via one-hot matmul.
    if gamma == 0.0:
        idx = jnp.zeros((rows, 1), jnp.int32)   # (exp(d)-1)*0 == 0; avoids inf*0 NaN
    else:
        energy = (jnp.exp(d) - 1.0) * gamma
        idx = jnp.clip(jnp.log(energy + 1.0), 0.0, 255.0).astype(jnp.int32)  # trunc==floor
    lanes = jax.lax.broadcasted_iota(jnp.int32, (rows, 256), 1)
    one_hot = (lanes == idx).astype(mxu_dtype)                               # exact in bf16
    emb_out_ref[...] = jnp.dot(one_hot, emb_ref[...],
                               preferred_element_type=jnp.float32
                               ).astype(emb_out_ref.dtype)


def _vmem_capacity_bytes():
    """Physical VMEM per core; conservative 64 MiB fallback (v7x budget)."""
    try:
        return int(pltpu.get_tpu_info().vmem_capacity_bytes)
    except Exception:
        return 64 * 1024 * 1024


def energy_predictor(x, params, gamma=1.0, row_tile=None,
                     mxu_dtype=jnp.bfloat16, emb_dtype=jnp.bfloat16):
    """x: (B, T, E) float32.

    Returns (x_dur, energy_embedding) matching EnergyPredictor.forward in eval
    mode with energy_target=None:
      x_dur:            (1, B, T) float32        ((1, T) when B == 1, torch squeeze-all)
      energy_embedding: (1, B, T, F) emb_dtype   ((1, T, F) when B == 1)
    The embedding table is consumed by the MXU in mxu_dtype, so bf16 output rows
    are lossless w.r.t. that table; pass emb_dtype=jnp.float32 for f32 containers.
    """
    B, T, E = x.shape
    F = params["w1"].shape[2]
    M = B * T

    vmem_cap = _vmem_capacity_bytes()
    if row_tile is None:
        # v5e/v6e expose ~128 MiB VMEM -> large tiles amortize the ~0.35 us/step
        # grid overhead; v7x has 64 MiB per TensorCore -> stay at 2048 rows.
        row_tile = 4096 if vmem_cap >= 96 * 1024 * 1024 else 2048

    # Fold B into the matmul M dimension; tile rows in multiples of 16 so the
    # bf16 blocks stay (16, 128)-sublane aligned.
    rows = max(16, (min(row_tile, ((M + 15) // 16) * 16) // 16) * 16)
    num_tiles = -(-M // rows)
    Mp = num_tiles * rows

    # x only ever feeds the MXU -> DMA it in bf16 (halves the dominant input stream).
    x2d = x.reshape(M, E).astype(mxu_dtype)
    if Mp != M:
        x2d = jnp.pad(x2d, ((0, Mp - M), (0, 0)))   # pad rows are masked/discarded

    # MXU operands in a narrow dtype (f32 accumulation in-kernel); LN/bias/linear
    # parameters stay f32 (no bf16 VPU/EUP on v5e).
    w1 = params["w1"].astype(mxu_dtype)
    w2 = params["w2"].astype(mxu_dtype)
    emb_tab = params["embed"].astype(mxu_dtype)
    wl_row = params["wl"].reshape(1, F).astype(jnp.float32)
    f32 = lambda a: a.astype(jnp.float32)

    blocks_per_tile = rows // HALO
    last_halo_block = Mp // HALO - 1

    # Weight/table blocks use a constant block index; they total ~1 MB at F=256
    # so default double buffering is kept.  pipeline_mode=pl.Buffered(1) on these
    # specs is the knob if a future config approaches the v7x 64 MiB budget.
    rep = lambda *shape: pl.BlockSpec(shape, lambda i: (0,) * len(shape))
    in_specs = [
        pl.BlockSpec((rows, E), lambda i: (i, 0)),                                  # x tile
        pl.BlockSpec((HALO, E),
                     lambda i: (jnp.maximum(i * blocks_per_tile - 1, 0), 0)),       # prev halo
        pl.BlockSpec((HALO, E),
                     lambda i: (jnp.minimum((i + 1) * blocks_per_tile,
                                            last_halo_block), 0)),                  # next halo
        rep(3, E, F), rep(1, F), rep(1, F), rep(1, F),     # conv1 w, b, LN gamma, LN beta
        rep(3, F, F), rep(1, F), rep(1, F), rep(1, F),     # conv2 w, b, LN gamma, LN beta
        rep(1, F), rep(1, 1),                              # linear w (row), b
        rep(256, F),                                       # energy embedding table
    ]
    out_specs = [
        pl.BlockSpec((rows, 1), lambda i: (i, 0)),         # duration logits (f32)
        pl.BlockSpec((rows, F), lambda i: (i, 0)),         # energy embedding (lane-dense F)
    ]

    wsize = jnp.dtype(mxu_dtype).itemsize
    esize = jnp.dtype(emb_dtype).itemsize
    param_bytes = wsize * (3 * E * F + 3 * F * F + 256 * F) + 4 * (8 * F + 1)
    cost = pl.CostEstimate(
        flops=int(2 * Mp * (3 * E * F + 3 * F * F + F + 256 * F)),
        transcendentals=int(4 * Mp),                       # 2x rsqrt, exp, log per row
        bytes_accessed=int(wsize * Mp * E + esize * Mp * F + 4 * Mp + param_bytes),
    )

    n_ext = rows + 2 * HALO
    tile_vmem = (
        2 * wsize * (rows * E + 2 * HALO * E)   # bf16 x tile + halo blocks (double buffered)
        + 2 * (esize * rows * F + 4 * rows)     # outputs (double buffered)
        + 2 * param_bytes                       # weights / embedding table
        + 4 * n_ext * (3 * E + 4 * F)           # f32 conv taps + LN intermediates
        + wsize * rows * 256                    # one-hot
    )
    vmem_limit = int(min(max(2 * tile_vmem, 32 * 1024 * 1024), int(0.9 * vmem_cap)))

    dur, emb = pl.pallas_call(
        functools.partial(energy_predictor_kernel, seq_len=T, rows=rows,
                          gamma=float(gamma), mxu_dtype=mxu_dtype),
        out_shape=(
            jax.ShapeDtypeStruct((Mp, 1), jnp.float32),
            jax.ShapeDtypeStruct((Mp, F), emb_dtype),
        ),
        grid_spec=pltpu.PrefetchScalarGridSpec(
            num_scalar_prefetch=0,
            grid=(num_tiles,),
            in_specs=in_specs,
            out_specs=out_specs,
        ),
        compiler_params=pltpu.CompilerParams(
            dimension_semantics=("parallel",),
            vmem_limit_bytes=vmem_limit,
        ),
        cost_estimate=cost,
    )(
        x2d, x2d, x2d,
        w1, f32(params["b1"]), f32(params["ln1_g"]), f32(params["ln1_b"]),
        w2, f32(params["b2"]), f32(params["ln2_g"]), f32(params["ln2_b"]),
        wl_row, f32(params["bl"]).reshape(1, 1),
        emb_tab,
    )

    dur_flat = dur[:M, 0]
    emb_flat = emb[:M]
    if B == 1:
        # torch out.squeeze() drops the batch dim too when B == 1.
        return dur_flat.reshape(1, T), emb_flat.reshape(1, T, F)
    # TODO(synk): T == 1 squeeze edge case and the energy_target-provided path
    # (same one-hot gather on log(target + 1)) are not wired.
    x_dur = dur_flat.reshape(B, T)[None]                    # (1, B, T)
    energy_embedding = emb_flat.reshape(B, T, F)[None]      # (1, B, T, F)
    return x_dur, energy_embedding


def make_params(key, encoder_dim, filter_size):
    ks = jax.random.split(key, 8)
    s = 0.05
    # Conv1d weights in torch are (Cout, Cin, K); we store (K, Cin, Cout).
    return {
        "w1": s * jax.random.normal(ks[0], (3, encoder_dim, filter_size), jnp.float32),
        "b1": s * jax.random.normal(ks[1], (1, filter_size), jnp.float32),
        "ln1_g": jnp.ones((1, filter_size), jnp.float32),
        "ln1_b": jnp.zeros((1, filter_size), jnp.float32),
        "w2": s * jax.random.normal(ks[2], (3, filter_size, filter_size), jnp.float32),
        "b2": s * jax.random.normal(ks[3], (1, filter_size), jnp.float32),
        "ln2_g": jnp.ones((1, filter_size), jnp.float32),
        "ln2_b": jnp.zeros((1, filter_size), jnp.float32),
        "wl": s * jax.random.normal(ks[4], (filter_size, 1), jnp.float32),
        "bl": s * jax.random.normal(ks[5], (1, 1), jnp.float32),
        "embed": jax.random.normal(ks[6], (256, filter_size), jnp.float32),
    }


def _reference_duration(x, params, mxu_dtype):
    """Pure-JAX duration-predictor reference mirroring the kernel's MXU dtypes."""
    B, T, _ = x.shape

    def conv_ln_relu(v, w, b, g, be):
        zp = jnp.zeros((B, 1, v.shape[-1]), v.dtype)
        vp = jnp.concatenate([zp, v[:, :-1]], axis=1)
        vn = jnp.concatenate([v[:, 1:], zp], axis=1)
        w = w.astype(mxu_dtype)
        h = jnp.einsum("btc,cf->btf", vp.astype(mxu_dtype), w[0],
                       preferred_element_type=jnp.float32)
        h = h + jnp.einsum("btc,cf->btf", v.astype(mxu_dtype), w[1],
                           preferred_element_type=jnp.float32)
        h = h + jnp.einsum("btc,cf->btf", vn.astype(mxu_dtype), w[2],
                           preferred_element_type=jnp.float32)
        h = h + b
        mu = jnp.mean(h, axis=-1, keepdims=True)
        var = jnp.mean((h - mu) ** 2, axis=-1, keepdims=True)
        h = (h - mu) * jax.lax.rsqrt(var + 1e-5) * g + be
        return jnp.maximum(h, 0.0)

    h = conv_ln_relu(x, params["w1"], params["b1"], params["ln1_g"], params["ln1_b"])
    h = conv_ln_relu(h, params["w2"], params["b2"], params["ln2_g"], params["ln2_b"])
    d = jnp.maximum(h @ params["wl"] + params["bl"], 0.0)
    return d[..., 0]                                         # (B, T)


if __name__ == "__main__":
    import numpy as np

    B, T = 2, 16
    encoder_dim = 32                    # model_config.encoder_dim
    filter_size = 32                    # model_config.duration_predictor_filter_size
    key = jax.random.PRNGKey(0)
    kx, kp = jax.random.split(key)
    x = jax.random.normal(kx, (B, T, encoder_dim), jnp.float32)
    params = make_params(kp, encoder_dim, filter_size)

    to_np = lambda a: np.asarray(jnp.asarray(a, jnp.float32))

    # Small row tile to exercise the multi-tile + halo path (2 grid steps here).
    x_dur, energy_embedding = energy_predictor(x, params, gamma=1.0, row_tile=16)
    jax.block_until_ready((x_dur, energy_embedding))
    assert x_dur.shape == (1, B, T)
    assert energy_embedding.shape == (1, B, T, filter_size)

    # Self-consistency: an auto-sized single-tile run must match the tiled run.
    x_dur1, emb1 = energy_predictor(x, params, gamma=1.0)
    jax.block_until_ready((x_dur1, emb1))
    np.testing.assert_allclose(to_np(x_dur), to_np(x_dur1), atol=1e-5, rtol=1e-5)
    np.testing.assert_allclose(to_np(energy_embedding), to_np(emb1),
                               atol=1e-5, rtol=1e-5)

    # Duration output vs. a pure-JAX reference using the same MXU dtypes.
    ref_d = _reference_duration(x, params, jnp.bfloat16)
    np.testing.assert_allclose(to_np(x_dur[0]), np.asarray(ref_d),
                               atol=2e-3, rtol=2e-3)

    # gamma == 0 static branch: duration unchanged, embedding is table row 0.
    x_dur0, emb0 = energy_predictor(x, params, gamma=0.0, row_tile=16)
    jax.block_until_ready((x_dur0, emb0))
    np.testing.assert_allclose(to_np(x_dur0), to_np(x_dur), atol=1e-6, rtol=1e-6)
    row0 = to_np(params["embed"][0].astype(jnp.bfloat16))
    np.testing.assert_allclose(to_np(emb0).reshape(-1, filter_size),
                               np.broadcast_to(row0, (B * T, filter_size)),
                               atol=1e-6, rtol=1e-6)

    print("KERNEL_OK")
</pallas_src>

<mosaic_0001>
module attributes {stable_mosaic.version = 11 : i64} {
  func.func @energy_predictor_kernel(%arg0: i32, %arg1: memref<16x32xbf16, #tpu.memory_space<vmem>>, %arg2: memref<16x32xbf16, #tpu.memory_space<vmem>>, %arg3: memref<16x32xbf16, #tpu.memory_space<vmem>>, %arg4: memref<3x32x32xbf16, #tpu.memory_space<vmem>>, %arg5: memref<1x32xf32, #tpu.memory_space<vmem>>, %arg6: memref<1x32xf32, #tpu.memory_space<vmem>>, %arg7: memref<1x32xf32, #tpu.memory_space<vmem>>, %arg8: memref<3x32x32xbf16, #tpu.memory_space<vmem>>, %arg9: memref<1x32xf32, #tpu.memory_space<vmem>>, %arg10: memref<1x32xf32, #tpu.memory_space<vmem>>, %arg11: memref<1x32xf32, #tpu.memory_space<vmem>>, %arg12: memref<1x32xf32, #tpu.memory_space<vmem>>, %arg13: memref<1x1xf32, #tpu.memory_space<vmem>>, %arg14: memref<256x32xbf16, #tpu.memory_space<vmem>>, %arg15: memref<16x1xf32, #tpu.memory_space<vmem>>, %arg16: memref<16x32xbf16, #tpu.memory_space<vmem>>) attributes {dimension_semantics = [#tpu.dimension_semantics<parallel>], iteration_bounds = array<i64: 2>, scalar_prefetch = 0 : i64, scratch_operands = 0 : i64, tpu.core_type = #tpu.core_type<tc>, window_params = [{transform_indices = @transform_0, window_bounds = array<i64: 16, 32>}, {transform_indices = @transform_1, window_bounds = array<i64: 16, 32>}, {transform_indices = @transform_2, window_bounds = array<i64: 16, 32>}, {pipeline_mode = #tpu.pipeline_mode<synchronous>, transform_indices = @transform_3, window_bounds = array<i64: 3, 32, 32>}, {pipeline_mode = #tpu.pipeline_mode<synchronous>, transform_indices = @transform_4, window_bounds = array<i64: 1, 32>}, {pipeline_mode = #tpu.pipeline_mode<synchronous>, transform_indices = @transform_5, window_bounds = array<i64: 1, 32>}, {pipeline_mode = #tpu.pipeline_mode<synchronous>, transform_indices = @transform_6, window_bounds = array<i64: 1, 32>}, {pipeline_mode = #tpu.pipeline_mode<synchronous>, transform_indices = @transform_7, window_bounds = array<i64: 3, 32, 32>}, {pipeline_mode = #tpu.pipeline_mode<synchronous>, transform_indices = @transform_8, window_bounds = array<i64: 1, 32>}, {pipeline_mode = #tpu.pipeline_mode<synchronous>, transform_indices = @transform_9, window_bounds = array<i64: 1, 32>}, {pipeline_mode = #tpu.pipeline_mode<synchronous>, transform_indices = @transform_10, window_bounds = array<i64: 1, 32>}, {pipeline_mode = #tpu.pipeline_mode<synchronous>, transform_indices = @transform_11, window_bounds = array<i64: 1, 32>}, {pipeline_mode = #tpu.pipeline_mode<synchronous>, transform_indices = @transform_12, window_bounds = array<i64: 1, 1>}, {pipeline_mode = #tpu.pipeline_mode<synchronous>, transform_indices = @transform_13, window_bounds = array<i64: 256, 32>}, {transform_indices = @transform_14, window_bounds = array<i64: 16, 1>}, {transform_indices = @transform_15, window_bounds = array<i64: 16, 32>}]} {
    %c0 = arith.constant 0 : index
    %c0_0 = arith.constant 0 : index
    %0 = vector.load %arg2[%c0, %c0_0] : memref<16x32xbf16, #tpu.memory_space<vmem>>, vector<16x32xbf16>
    %c0_1 = arith.constant 0 : index
    %c0_2 = arith.constant 0 : index
    %1 = vector.load %arg1[%c0_1, %c0_2] : memref<16x32xbf16, #tpu.memory_space<vmem>>, vector<16x32xbf16>
    %c0_3 = arith.constant 0 : index
    %c0_4 = arith.constant 0 : index
    %2 = vector.load %arg3[%c0_3, %c0_4] : memref<16x32xbf16, #tpu.memory_space<vmem>>, vector<16x32xbf16>
    %3 = tpu.concatenate %0, %1, %2 in 0 : vector<16x32xbf16>, vector<16x32xbf16>, vector<16x32xbf16> -> vector<48x32xbf16>
    %c16_i32 = arith.constant 16 : i32
    %4 = arith.muli %arg0, %c16_i32 : i32
    %c16_i32_5 = arith.constant 16 : i32
    %5 = arith.subi %4, %c16_i32_5 : i32
    %6 = tpu.iota {dimensions = array<i32: 0>} : vector<48x1xi32>
    %7 = vector.broadcast %5 : i32 to vector<48x1xi32>
    %8 = arith.addi %7, %6 : vector<48x1xi32>
    %c16_i32_6 = arith.constant 16 : i32
    %c0_i32 = arith.constant 0 : i32
    %9 = arith.cmpi eq, %c16_i32_6, %c0_i32 : i32
    %c1_i32 = arith.constant 1 : i32
    %10 = arith.select %9, %c1_i32, %c16_i32_6 : i32
    %11 = vector.broadcast %10 : i32 to vector<48x1xi32>
    %12 = arith.remsi %8, %11 : vector<48x1xi32>
    %c0_i32_7 = arith.constant 0 : i32
    %13 = vector.broadcast %c0_i32_7 : i32 to vector<48x1xi32>
    %14 = arith.cmpi ne, %12, %13 : vector<48x1xi32>
    %c0_i32_8 = arith.constant 0 : i32
    %15 = vector.broadcast %c0_i32_8 : i32 to vector<48x1xi32>
    %16 = arith.cmpi slt, %12, %15 : vector<48x1xi32>
    %c0_i32_9 = arith.constant 0 : i32
    %17 = arith.cmpi slt, %10, %c0_i32_9 : i32
    %18 = vector.broadcast %17 : i1 to vector<48x1xi1>
    %19 = vector.broadcast %18 : vector<48x1xi1> to vector<48x1xi1>
    %20 = arith.xori %16, %19 : vector<48x1xi1>
    %21 = arith.andi %20, %14 : vector<48x1xi1>
    %22 = vector.broadcast %10 : i32 to vector<48x1xi32>
    %23 = arith.addi %12, %22 : vector<48x1xi32>
    %24 = arith.select %21, %23, %12 : vector<48x1xi1>, vector<48x1xi32>
    %c0_i32_10 = arith.constant 0 : i32
    %25 = vector.broadcast %c0_i32_10 : i32 to vector<48x1xi32>
    %26 = arith.cmpi ne, %24, %25 : vector<48x1xi32>
    %c15_i32 = arith.constant 15 : i32
    %27 = vector.broadcast %c15_i32 : i32 to vector<48x1xi32>
    %28 = arith.cmpi ne, %24, %27 : vector<48x1xi32>
    %29 = arith.extf %3 : vector<48x32xbf16> to vector<48x32xf32>
    %c1_i32_11 = arith.constant 1 : i32
    %30 = tpu.dynamic_rotate %29 by %c1_i32_11 dim 0 : vector<48x32xf32>, i32 -> vector<48x32xf32>
    %cst = arith.constant 0.000000e+00 : f32
    %31 = vector.shape_cast %26 : vector<48x1xi1> to vector<48x1xi1>
    %32 = vector.broadcast %31 : vector<48x1xi1> to vector<48x32xi1>
    %33 = vector.broadcast %cst : f32 to vector<48x32xf32>
    %34 = arith.select %32, %30, %33 : vector<48x32xi1>, vector<48x32xf32>
    %c47_i32 = arith.constant 47 : i32
    %35 = tpu.dynamic_rotate %29 by %c47_i32 dim 0 : vector<48x32xf32>, i32 -> vector<48x32xf32>
    %cst_12 = arith.constant 0.000000e+00 : f32
    %36 = vector.shape_cast %28 : vector<48x1xi1> to vector<48x1xi1>
    %37 = vector.broadcast %36 : vector<48x1xi1> to vector<48x32xi1>
    %38 = vector.broadcast %cst_12 : f32 to vector<48x32xf32>
    %39 = arith.select %37, %35, %38 : vector<48x32xi1>, vector<48x32xf32>
    %40 = arith.truncf %34 : vector<48x32xf32> to vector<48x32xbf16>
    %c0_13 = arith.constant 0 : index
    %c0_14 = arith.constant 0 : index
    %c0_15 = arith.constant 0 : index
    %41 = vector.load %arg4[%c0_13, %c0_14, %c0_15] : memref<3x32x32xbf16, #tpu.memory_space<vmem>>, vector<1x32x32xbf16>
    %42 = vector.shape_cast %41 : vector<1x32x32xbf16> to vector<32x32xbf16>
    %cst_16 = arith.constant dense<0.000000e+00> : vector<48x32xf32>
    %43 = tpu.matmul %40, %42, %cst_16 {dimension_numbers = #tpu.dot_dimension_numbers<[1], [0], [0], [1], [0, 0, 1, 1], [], []>} : vector<48x32xbf16>, vector<32x32xbf16>, vector<48x32xf32> -> vector<48x32xf32>
    %c1 = arith.constant 1 : index
    %c0_17 = arith.constant 0 : index
    %c0_18 = arith.constant 0 : index
    %44 = vector.load %arg4[%c1, %c0_17, %c0_18] : memref<3x32x32xbf16, #tpu.memory_space<vmem>>, vector<1x32x32xbf16>
    %45 = vector.shape_cast %44 : vector<1x32x32xbf16> to vector<32x32xbf16>
    %cst_19 = arith.constant dense<0.000000e+00> : vector<48x32xf32>
    %46 = tpu.matmul %3, %45, %cst_19 {dimension_numbers = #tpu.dot_dimension_numbers<[1], [0], [0], [1], [0, 0, 1, 1], [], []>} : vector<48x32xbf16>, vector<32x32xbf16>, vector<48x32xf32> -> vector<48x32xf32>
    %47 = arith.addf %43, %46 : vector<48x32xf32>
    %48 = arith.truncf %39 : vector<48x32xf32> to vector<48x32xbf16>
    %c2 = arith.constant 2 : index
    %c0_20 = arith.constant 0 : index
    %c0_21 = arith.constant 0 : index
    %49 = vector.load %arg4[%c2, %c0_20, %c0_21] : memref<3x32x32xbf16, #tpu.memory_space<vmem>>, vector<1x32x32xbf16>
    %50 = vector.shape_cast %49 : vector<1x32x32xbf16> to vector<32x32xbf16>
    %cst_22 = arith.constant dense<0.000000e+00> : vector<48x32xf32>
    %51 = tpu.matmul %48, %50, %cst_22 {dimension_numbers = #tpu.dot_dimension_numbers<[1], [0], [0], [1], [0, 0, 1, 1], [], []>} : vector<48x32xbf16>, vector<32x32xbf16>, vector<48x32xf32> -> vector<48x32xf32>
    %52 = arith.addf %47, %51 : vector<48x32xf32>
    %c0_23 = arith.constant 0 : index
    %c0_24 = arith.constant 0 : index
    %53 = vector.load %arg5[%c0_23, %c0_24] : memref<1x32xf32, #tpu.memory_space<vmem>>, vector<1x32xf32>
    %54 = vector.broadcast %53 : vector<1x32xf32> to vector<48x32xf32>
    %55 = arith.addf %52, %54 : vector<48x32xf32>
    %cst_25 = arith.constant dense<0.000000e+00> : vector<48xf32>
    %56 = vector.multi_reduction <add>, %55, %cst_25 [1] : vector<48x32xf32> to vector<48xf32>
    %57 = vector.shape_cast %56 : vector<48xf32> to vector<48x1xf32>
    %cst_26 = arith.constant 3.200000e+01 : f32
    %58 = vector.broadcast %cst_26 : f32 to vector<48x1xf32>
    %59 = arith.divf %57, %58 : vector<48x1xf32>
    %60 = arith.mulf %55, %55 : vector<48x32xf32>
    %cst_27 = arith.constant dense<0.000000e+00> : vector<48xf32>
    %61 = vector.multi_reduction <add>, %60, %cst_27 [1] : vector<48x32xf32> to vector<48xf32>
    %62 = vector.shape_cast %61 : vector<48xf32> to vector<48x1xf32>
    %cst_28 = arith.constant 3.200000e+01 : f32
    %63 = vector.broadcast %cst_28 : f32 to vector<48x1xf32>
    %64 = arith.divf %62, %63 : vector<48x1xf32>
    %65 = arith.mulf %59, %59 : vector<48x1xf32>
    %66 = arith.subf %64, %65 : vector<48x1xf32>
    %cst_29 = arith.constant 0.000000e+00 : f32
    %67 = vector.broadcast %cst_29 : f32 to vector<48x1xf32>
    %68 = arith.maximumf %66, %67 : vector<48x1xf32>
    %69 = vector.broadcast %59 : vector<48x1xf32> to vector<48x32xf32>
    %70 = arith.subf %55, %69 : vector<48x32xf32>
    %cst_30 = arith.constant 9.99999974E-6 : f32
    %71 = vector.broadcast %cst_30 : f32 to vector<48x1xf32>
    %72 = arith.addf %68, %71 : vector<48x1xf32>
    %73 = math.rsqrt %72 : vector<48x1xf32>
    %74 = vector.broadcast %73 : vector<48x1xf32> to vector<48x32xf32>
    %75 = arith.mulf %70, %74 : vector<48x32xf32>
    %c0_31 = arith.constant 0 : index
    %c0_32 = arith.constant 0 : index
    %76 = vector.load %arg6[%c0_31, %c0_32] : memref<1x32xf32, #tpu.memory_space<vmem>>, vector<1x32xf32>
    %77 = vector.broadcast %76 : vector<1x32xf32> to vector<48x32xf32>
    %78 = arith.mulf %75, %77 : vector<48x32xf32>
    %c0_33 = arith.constant 0 : index
    %c0_34 = arith.constant 0 : index
    %79 = vector.load %arg7[%c0_33, %c0_34] : memref<1x32xf32, #tpu.memory_space<vmem>>, vector<1x32xf32>
    %80 = vector.broadcast %79 : vector<1x32xf32> to vector<48x32xf32>
    %81 = arith.addf %78, %80 : vector<48x32xf32>
    %cst_35 = arith.constant 0.000000e+00 : f32
    %82 = vector.broadcast %cst_35 : f32 to vector<48x32xf32>
    %83 = arith.maximumf %81, %82 : vector<48x32xf32>
    %c1_i32_36 = arith.constant 1 : i32
    %84 = tpu.dynamic_rotate %83 by %c1_i32_36 dim 0 : vector<48x32xf32>, i32 -> vector<48x32xf32>
    %cst_37 = arith.constant 0.000000e+00 : f32
    %85 = vector.shape_cast %26 : vector<48x1xi1> to vector<48x1xi1>
    %86 = vector.broadcast %85 : vector<48x1xi1> to vector<48x32xi1>
    %87 = vector.broadcast %cst_37 : f32 to vector<48x32xf32>
    %88 = arith.select %86, %84, %87 : vector<48x32xi1>, vector<48x32xf32>
    %c47_i32_38 = arith.constant 47 : i32
    %89 = tpu.dynamic_rotate %83 by %c47_i32_38 dim 0 : vector<48x32xf32>, i32 -> vector<48x32xf32>
    %cst_39 = arith.constant 0.000000e+00 : f32
    %90 = vector.shape_cast %28 : vector<48x1xi1> to vector<48x1xi1>
    %91 = vector.broadcast %90 : vector<48x1xi1> to vector<48x32xi1>
    %92 = vector.broadcast %cst_39 : f32 to vector<48x32xf32>
    %93 = arith.select %91, %89, %92 : vector<48x32xi1>, vector<48x32xf32>
    %94 = arith.truncf %88 : vector<48x32xf32> to vector<48x32xbf16>
    %c0_40 = arith.constant 0 : index
    %c0_41 = arith.constant 0 : index
    %c0_42 = arith.constant 0 : index
    %95 = vector.load %arg8[%c0_40, %c0_41, %c0_42] : memref<3x32x32xbf16, #tpu.memory_space<vmem>>, vector<1x32x32xbf16>
    %96 = vector.shape_cast %95 : vector<1x32x32xbf16> to vector<32x32xbf16>
    %cst_43 = arith.constant dense<0.000000e+00> : vector<48x32xf32>
    %97 = tpu.matmul %94, %96, %cst_43 {dimension_numbers = #tpu.dot_dimension_numbers<[1], [0], [0], [1], [0, 0, 1, 1], [], []>} : vector<48x32xbf16>, vector<32x32xbf16>, vector<48x32xf32> -> vector<48x32xf32>
    %98 = arith.truncf %83 : vector<48x32xf32> to vector<48x32xbf16>
    %c1_44 = arith.constant 1 : index
    %c0_45 = arith.constant 0 : index
    %c0_46 = arith.constant 0 : index
    %99 = vector.load %arg8[%c1_44, %c0_45, %c0_46] : memref<3x32x32xbf16, #tpu.memory_space<vmem>>, vector<1x32x32xbf16>
    %100 = vector.shape_cast %99 : vector<1x32x32xbf16> to vector<32x32xbf16>
    %cst_47 = arith.constant dense<0.000000e+00> : vector<48x32xf32>
    %101 = tpu.matmul %98, %100, %cst_47 {dimension_numbers = #tpu.dot_dimension_numbers<[1], [0], [0], [1], [0, 0, 1, 1], [], []>} : vector<48x32xbf16>, vector<32x32xbf16>, vector<48x32xf32> -> vector<48x32xf32>
    %102 = arith.addf %97, %101 : vector<48x32xf32>
    %103 = arith.truncf %93 : vector<48x32xf32> to vector<48x32xbf16>
    %c2_48 = arith.constant 2 : index
    %c0_49 = arith.constant 0 : index
    %c0_50 = arith.constant 0 : index
    %104 = vector.load %arg8[%c2_48, %c0_49, %c0_50] : memref<3x32x32xbf16, #tpu.memory_space<vmem>>, vector<1x32x32xbf16>
    %105 = vector.shape_cast %104 : vector<1x32x32xbf16> to vector<32x32xbf16>
    %cst_51 = arith.constant dense<0.000000e+00> : vector<48x32xf32>
    %106 = tpu.matmul %103, %105, %cst_51 {dimension_numbers = #tpu.dot_dimension_numbers<[1], [0], [0], [1], [0, 0, 1, 1], [], []>} : vector<48x32xbf16>, vector<32x32xbf16>, vector<48x32xf32> -> vector<48x32xf32>
    %107 = arith.addf %102, %106 : vector<48x32xf32>
    %c0_52 = arith.constant 0 : index
    %c0_53 = arith.constant 0 : index
    %108 = vector.load %arg9[%c0_52, %c0_53] : memref<1x32xf32, #tpu.memory_space<vmem>>, vector<1x32xf32>
    %109 = vector.broadcast %108 : vector<1x32xf32> to vector<48x32xf32>
    %110 = arith.addf %107, %109 : vector<48x32xf32>
    %cst_54 = arith.constant dense<0.000000e+00> : vector<48xf32>
    %111 = vector.multi_reduction <add>, %110, %cst_54 [1] : vector<48x32xf32> to vector<48xf32>
    %112 = vector.shape_cast %111 : vector<48xf32> to vector<48x1xf32>
    %cst_55 = arith.constant 3.200000e+01 : f32
    %113 = vector.broadcast %cst_55 : f32 to vector<48x1xf32>
    %114 = arith.divf %112, %113 : vector<48x1xf32>
    %115 = arith.mulf %110, %110 : vector<48x32xf32>
    %cst_56 = arith.constant dense<0.000000e+00> : vector<48xf32>
    %116 = vector.multi_reduction <add>, %115, %cst_56 [1] : vector<48x32xf32> to vector<48xf32>
    %117 = vector.shape_cast %116 : vector<48xf32> to vector<48x1xf32>
    %cst_57 = arith.constant 3.200000e+01 : f32
    %118 = vector.broadcast %cst_57 : f32 to vector<48x1xf32>
    %119 = arith.divf %117, %118 : vector<48x1xf32>
    %120 = arith.mulf %114, %114 : vector<48x1xf32>
    %121 = arith.subf %119, %120 : vector<48x1xf32>
    %cst_58 = arith.constant 0.000000e+00 : f32
    %122 = vector.broadcast %cst_58 : f32 to vector<48x1xf32>
    %123 = arith.maximumf %121, %122 : vector<48x1xf32>
    %124 = vector.broadcast %114 : vector<48x1xf32> to vector<48x32xf32>
    %125 = arith.subf %110, %124 : vector<48x32xf32>
    %cst_59 = arith.constant 9.99999974E-6 : f32
    %126 = vector.broadcast %cst_59 : f32 to vector<48x1xf32>
    %127 = arith.addf %123, %126 : vector<48x1xf32>
    %128 = math.rsqrt %127 : vector<48x1xf32>
    %129 = vector.broadcast %128 : vector<48x1xf32> to vector<48x32xf32>
    %130 = arith.mulf %125, %129 : vector<48x32xf32>
    %c0_60 = arith.constant 0 : index
    %c0_61 = arith.constant 0 : index
    %131 = vector.load %arg10[%c0_60, %c0_61] : memref<1x32xf32, #tpu.memory_space<vmem>>, vector<1x32xf32>
    %132 = vector.broadcast %131 : vector<1x32xf32> to vector<48x32xf32>
    %133 = arith.mulf %130, %132 : vector<48x32xf32>
    %c0_62 = arith.constant 0 : index
    %c0_63 = arith.constant 0 : index
    %134 = vector.load %arg11[%c0_62, %c0_63] : memref<1x32xf32, #tpu.memory_space<vmem>>, vector<1x32xf32>
    %135 = vector.broadcast %134 : vector<1x32xf32> to vector<48x32xf32>
    %136 = arith.addf %133, %135 : vector<48x32xf32>
    %cst_64 = arith.constant 0.000000e+00 : f32
    %137 = vector.broadcast %cst_64 : f32 to vector<48x32xf32>
    %138 = arith.maximumf %136, %137 : vector<48x32xf32>
    %139 = vector.extract_strided_slice %138 {offsets = [16, 0], sizes = [16, 32], strides = [1, 1]} : vector<48x32xf32> to vector<16x32xf32>
    %c0_65 = arith.constant 0 : index
    %c0_66 = arith.constant 0 : index
    %140 = vector.load %arg12[%c0_65, %c0_66] : memref<1x32xf32, #tpu.memory_space<vmem>>, vector<1x32xf32>
    %141 = vector.broadcast %140 : vector<1x32xf32> to vector<16x32xf32>
    %142 = arith.mulf %139, %141 : vector<16x32xf32>
    %cst_67 = arith.constant dense<0.000000e+00> : vector<16xf32>
    %143 = vector.multi_reduction <add>, %142, %cst_67 [1] : vector<16x32xf32> to vector<16xf32>
    %144 = vector.shape_cast %143 : vector<16xf32> to vector<16x1xf32>
    %c0_68 = arith.constant 0 : index
    %c0_69 = arith.constant 0 : index
    %145 = vector.load %arg13[%c0_68, %c0_69] : memref<1x1xf32, #tpu.memory_space<vmem>>, vector<1x1xf32>
    %146 = vector.broadcast %145 : vector<1x1xf32> to vector<16x1xf32>
    %147 = arith.addf %144, %146 : vector<16x1xf32>
    %cst_70 = arith.constant 0.000000e+00 : f32
    %148 = vector.broadcast %cst_70 : f32 to vector<16x1xf32>
    %149 = arith.maximumf %147, %148 : vector<16x1xf32>
    %c0_71 = arith.constant 0 : index
    %c0_72 = arith.constant 0 : index
    %150 = vector.load %arg15[%c0_71, %c0_72] : memref<16x1xf32, #tpu.memory_space<vmem>>, vector<16x1xf32>
    tpu.vector_store %arg15[%c0_71, %c0_72], %149 {strides = array<i32>} : memref<16x1xf32, #tpu.memory_space<vmem>>, vector<16x1xf32>,
    %151 = math.exp %149 : vector<16x1xf32>
    %cst_73 = arith.constant 1.000000e+00 : f32
    %152 = vector.broadcast %cst_73 : f32 to vector<16x1xf32>
    %153 = arith.subf %151, %152 : vector<16x1xf32>
    %cst_74 = arith.constant 1.000000e+00 : f32
    %154 = vector.broadcast %cst_74 : f32 to vector<16x1xf32>
    %155 = arith.mulf %153, %154 : vector<16x1xf32>
    %cst_75 = arith.constant 1.000000e+00 : f32
    %156 = vector.broadcast %cst_75 : f32 to vector<16x1xf32>
    %157 = arith.addf %155, %156 : vector<16x1xf32>
    %158 = math.log %157 : vector<16x1xf32>
    %cst_76 = arith.constant 0.000000e+00 : f32
    %cst_77 = arith.constant 2.550000e+02 : f32
    %159 = vector.broadcast %cst_76 : f32 to vector<16x1xf32>
    %160 = arith.maximumf %159, %158 : vector<16x1xf32>
    %161 = vector.broadcast %cst_77 : f32 to vector<16x1xf32>
    %162 = arith.minimumf %161, %160 : vector<16x1xf32>
    %163 = arith.fptosi %162 : vector<16x1xf32> to vector<16x1xi32>
    %164 = tpu.iota {dimensions = array<i32: 1>} : vector<16x256xi32>
    %165 = vector.broadcast %163 : vector<16x1xi32> to vector<16x256xi32>
    %166 = arith.cmpi eq, %164, %165 : vector<16x256xi32>
    %167 = arith.extui %166 : vector<16x256xi1> to vector<16x256xi32>
    %168 = arith.sitofp %167 : vector<16x256xi32> to vector<16x256xf32>
    %169 = arith.truncf %168 : vector<16x256xf32> to vector<16x256xbf16>
    %c0_78 = arith.constant 0 : index
    %c0_79 = arith.constant 0 : index
    %170 = vector.load %arg14[%c0_78, %c0_79] : memref<256x32xbf16, #tpu.memory_space<vmem>>, vector<256x32xbf16>
    %cst_80 = arith.constant dense<0.000000e+00> : vector<16x32xf32>
    %171 = tpu.matmul %169, %170, %cst_80 {dimension_numbers = #tpu.dot_dimension_numbers<[1], [0], [0], [1], [0, 0, 1, 1], [], []>} : vector<16x256xbf16>, vector<256x32xbf16>, vector<16x32xf32> -> vector<16x32xf32>
    %172 = arith.truncf %171 : vector<16x32xf32> to vector<16x32xbf16>
    %c0_81 = arith.constant 0 : index
    %c0_82 = arith.constant 0 : index
    %173 = vector.load %arg16[%c0_81, %c0_82] : memref<16x32xbf16, #tpu.memory_space<vmem>>, vector<16x32xbf16>
    tpu.vector_store %arg16[%c0_81, %c0_82], %172 {strides = array<i32>} : memref<16x32xbf16, #tpu.memory_space<vmem>>, vector<16x32xbf16>,
    return
  }
  func.func @transform_0(%arg0: i32) -> (i32, i32) {
    %c0_i32 = arith.constant 0 : i32
    %c0_i32_0 = arith.constant 0 : i32
    return %arg0, %c0_i32 : i32, i32
  }
  func.func @transform_1(%arg0: i32) -> (i32, i32) {
    %c1_i32 = arith.constant 1 : i32
    %0 = arith.muli %arg0, %c1_i32 : i32
    %c1_i32_0 = arith.constant 1 : i32
    %1 = arith.subi %0, %c1_i32_0 : i32
    %c0_i32 = arith.constant 0 : i32
    %2 = arith.maxsi %1, %c0_i32 : i32
    %c0_i32_1 = arith.constant 0 : i32
    %c0_i32_2 = arith.constant 0 : i32
    return %2, %c0_i32_1 : i32, i32
  }
  func.func @transform_2(%arg0: i32) -> (i32, i32) {
    %c1_i32 = arith.constant 1 : i32
    %0 = arith.addi %arg0, %c1_i32 : i32
    %c1_i32_0 = arith.constant 1 : i32
    %1 = arith.muli %0, %c1_i32_0 : i32
    %c1_i32_1 = arith.constant 1 : i32
    %2 = arith.minsi %1, %c1_i32_1 : i32
    %c0_i32 = arith.constant 0 : i32
    %c0_i32_2 = arith.constant 0 : i32
    return %2, %c0_i32 : i32, i32
  }
  func.func @transform_3(%arg0: i32) -> (i32, i32, i32) {
    %c0_i32 = arith.constant 0 : i32
    %c0_i32_0 = arith.constant 0 : i32
    %c0_i32_1 = arith.constant 0 : i32
    %c0_i32_2 = arith.constant 0 : i32
    return %c0_i32, %c0_i32_0, %c0_i32_1 : i32, i32, i32
  }
  func.func @transform_4(%arg0: i32) -> (i32, i32) {
    %c0_i32 = arith.constant 0 : i32
    %c0_i32_0 = arith.constant 0 : i32
    %c0_i32_1 = arith.constant 0 : i32
    return %c0_i32, %c0_i32_0 : i32, i32
  }
  func.func @transform_5(%arg0: i32) -> (i32, i32) {
    %c0_i32 = arith.constant 0 : i32
    %c0_i32_0 = arith.constant 0 : i32
    %c0_i32_1 = arith.constant 0 : i32
    return %c0_i32, %c0_i32_0 : i32, i32
  }
  func.func @transform_6(%arg0: i32) -> (i32, i32) {
    %c0_i32 = arith.constant 0 : i32
    %c0_i32_0 = arith.constant 0 : i32
    %c0_i32_1 = arith.constant 0 : i32
    return %c0_i32, %c0_i32_0 : i32, i32
  }
  func.func @transform_7(%arg0: i32) -> (i32, i32, i32) {
    %c0_i32 = arith.constant 0 : i32
    %c0_i32_0 = arith.constant 0 : i32
    %c0_i32_1 = arith.constant 0 : i32
    %c0_i32_2 = arith.constant 0 : i32
    return %c0_i32, %c0_i32_0, %c0_i32_1 : i32, i32, i32
  }
  func.func @transform_8(%arg0: i32) -> (i32, i32) {
    %c0_i32 = arith.constant 0 : i32
    %c0_i32_0 = arith.constant 0 : i32
    %c0_i32_1 = arith.constant 0 : i32
    return %c0_i32, %c0_i32_0 : i32, i32
  }
  func.func @transform_9(%arg0: i32) -> (i32, i32) {
    %c0_i32 = arith.constant 0 : i32
    %c0_i32_0 = arith.constant 0 : i32
    %c0_i32_1 = arith.constant 0 : i32
    return %c0_i32, %c0_i32_0 : i32, i32
  }
  func.func @transform_10(%arg0: i32) -> (i32, i32) {
    %c0_i32 = arith.constant 0 : i32
    %c0_i32_0 = arith.constant 0 : i32
    %c0_i32_1 = arith.constant 0 : i32
    return %c0_i32, %c0_i32_0 : i32, i32
  }
  func.func @transform_11(%arg0: i32) -> (i32, i32) {
    %c0_i32 = arith.constant 0 : i32
    %c0_i32_0 = arith.constant 0 : i32
    %c0_i32_1 = arith.constant 0 : i32
    return %c0_i32, %c0_i32_0 : i32, i32
  }
  func.func @transform_12(%arg0: i32) -> (i32, i32) {
    %c0_i32 = arith.constant 0 : i32
    %c0_i32_0 = arith.constant 0 : i32
    %c0_i32_1 = arith.constant 0 : i32
    return %c0_i32, %c0_i32_0 : i32, i32
  }
  func.func @transform_13(%arg0: i32) -> (i32, i32) {
    %c0_i32 = arith.constant 0 : i32
    %c0_i32_0 = arith.constant 0 : i32
    %c0_i32_1 = arith.constant 0 : i32
    return %c0_i32, %c0_i32_0 : i32, i32
  }
  func.func @transform_14(%arg0: i32) -> (i32, i32) {
    %c0_i32 = arith.constant 0 : i32
    %c0_i32_0 = arith.constant 0 : i32
    return %arg0, %c0_i32 : i32, i32
  }
  func.func @transform_15(%arg0: i32) -> (i32, i32) {
    %c0_i32 = arith.constant 0 : i32
    %c0_i32_0 = arith.constant 0 : i32
    return %arg0, %c0_i32 : i32, i32
  }
}

</mosaic_0001>

<bundles_post_ra>
// kernel: tpu_custom_call.1
= control target key start
LH: loop header
LB: loop body
LE: loop exit
PB: predicated region body
PF: predicated region fallthrough
CT: control target
= control target key end

     0   :  { %s2998_s0 = inlined_call_operand.vmem [shape: bf16[32,32], index: 0, kind: input, shape index: {}]   ;;  %s2999_s1 = inlined_call_operand.vmem [shape: bf16[32,32], index: 1, kind: input, shape index: {}]   ;;  %s3000_s2 = inlined_call_operand.vmem [shape: bf16[32,32], index: 2, kind: input, shape index: {}]   ;;  %s3001_s3 = inlined_call_operand.vmem [shape: bf16[3,32,32], index: 3, kind: input, shape index: {}]   ;;  %s3002_s4 = inlined_call_operand.vmem [shape: f32[1,32], index: 4, kind: input, shape index: {}]   ;;  %s3003_s5 = inlined_call_operand.vmem [shape: f32[1,32], index: 5, kind: input, shape index: {}]   ;;  %s3004_s6 = inlined_call_operand.vmem [shape: f32[1,32], index: 6, kind: input, shape index: {}]   ;;  %s3005_s7 = inlined_call_operand.vmem [shape: bf16[3,32,32], index: 7, kind: input, shape index: {}]   ;;  %s3006_s8 = inlined_call_operand.vmem [shape: f32[1,32], index: 8, kind: input, shape index: {}]   ;;  %s3007_s9 = inlined_call_operand.vmem [shape: f32[1,32], index: 9, kind: input, shape index: {}]   ;;  %s3008_s10 = inlined_call_operand.vmem [shape: f32[1,32], index: 10, kind: input, shape index: {}]   ;;  %s3009_s11 = inlined_call_operand.vmem [shape: f32[1,32], index: 11, kind: input, shape index: {}]   ;;  %s3010_s12 = inlined_call_operand.<no memory space> [shape: f32[1,1], index: 12, kind: input, shape index: {}]   ;;  %s3011_s13 = inlined_call_operand.vmem [shape: bf16[256,32], index: 13, kind: input, shape index: {}]   ;;  %s3012_s14 = inlined_call_operand.vmem [shape: f32[32,1], index: 14, kind: output, shape index: {0}]   ;;  %s3013_s15 = inlined_call_operand.hbm [shape: bf16[32,32], index: 15, kind: output, shape index: {1}]  }
   0x1   :  { %3026 = sst [smem:[#allocation14_spill]] %s3013_s15  ;;  %v21_v0 = vstv %s3010_s12 }
   0x2   :  { %22 = vst [vmem:[#allocation2] sm:$0x1] %v21_v0 }
   0x3   :  { %23 = vsyncpa [#allocation4], 0 }
   0x4   :  { %25 = vsyncpa [#allocation4 + $0x1], 0  ;;  %s2451_s20 = smov 0   ;;  %s2453_s21 = smov 0  }
   0x5   :  { %s2455_s22 = smov 0   ;;  %s2457_s23 = smov 0  }
   0x6 LB: > { %3027 = sst [smem:[#allocation6_spill]] %s2347_s20  ;;  %s2472_s12 = sadd.s32 4294967295, %s2359_s23   ;;  %s2359_s23 = sphi %s2457_s23, %s3047_s23   ;;  %s2355_s22 = sphi %s2455_s22, %s3050_s22   ;;  %s2351_s21 = sphi %s2453_s21, %s3049_s21   ;;  %s2347_s20 = sphi %s2451_s20, %s3048_s20  }
   0x7   : > { %3028 = sst [smem:[#allocation7_spill]] %s2351_s21  ;;  %s1922_s24 = sadd.s32 4294967294, %s2359_s23  }
   0x8   : > { %3029 = sst [smem:[#allocation8_spill]] %s2355_s22  ;;  %s2476_s25 = sadd.s32 1, %s2359_s23  }
   0x9   : > { %3030 = sst [smem:[#allocation9_spill]] %s2359_s23  ;;  %s385_s26 = sadd.s32 1, %s2355_s22 }
   0xa   : > { %3031 = sst [smem:[#allocation10_spill]] %s2476_s25  ;;  %s382_s27 = ssub.s32 %s2359_s23, %s2476_s25 }
   0xb   : > { %p395_p0 = scmp.ne.s32.totalorder %s2355_s22, %s2351_s21  ;;  %p383_p1 = scmp.eq.s32.totalorder %s382_s27, 0 }
   0xc   : > { %p396_p2 = scmp.eq.s32.totalorder %s2472_s12, 1  ;;  %p401_p3 = scmp.ne.s32.totalorder %s2351_s21, %s2347_s20 }
   0xd   : > { %p402_p4 = scmp.eq.s32.totalorder %s1922_s24, 1  ;;  %p1927_p7 = scmp.ge.s32.totalorder %s2359_s23, 1 }
   0xe   : > { %s2487_s28 = scalar_select %p383_p1, %s2355_s22, %s385_s26  }
   0xf   : > { %p2489_p5 = por %p396_p2, %p395_p0  ;;  %p2493_p6 = por %p402_p4, %p401_p3 }
  0x10   : > { %3032 = sst [smem:[#allocation11_spill]] %s2487_s28  ;;  %p492_p8 = scmp.lt.s32.totalorder %s2359_s23, 3 }
  0x11   : > { %s3033_s29 = scalar_select %p2489_p5, 1, 0 }
  0x12   : > { %s3035_s30 = scalar_select %p2493_p6, 1, 0 }
  0x13   : > { %3034 = sst [smem:[#allocation12_spill]] %s3033_s29  ;;  %p493_p9 = pnand %p1927_p7, %p492_p8 }
  0x14   : > { %3036 = sst [smem:[#allocation13_spill]] %s3035_s30  ;;  %v2242_v1 = vld [vmem:[%s3001_s3 + $0x10] sm:$0xff] (!%p493_p9)   ;;  %v2361_v2 = vmov (!%p493_p9), 0.0   ;;  %v2243_v3 = vld [vmem:[%s3001_s3 + $0x18] sm:$0xff] (!%p493_p9)   ;;  %s1931_s24 = sadd.s32 (!%p493_p9), 4294967295, %s2472_s12  ;;  %v625_v4 = vlaneseq (!%p493_p9)  ;;  %vm2362_vm0 = vmmov (!%p493_p9), 0  }
  0x15   : > { %496 = sbr.rel (%p493_p9) target bundleno = 1422 (0x58e), region = 76  ;;  %2091 = vmatprep.subr.bf16.mxu0 (!%p493_p9), %v2361_v2  ;;  %2187 = vmatprep.subr.bf16.mxu1 (!%p493_p9), %v2361_v2  ;;  %p568_p10 = scmp.gt.s32.totalorder (!%p493_p9), %s1931_s24, 0  ;;  %vm815_vm1 = vcmask (!%p493_p9), 261120   ;;  %v2245_v8 = vld [vmem:[%s3001_s3 + $0x20] sm:$0xff] (!%p493_p9)   ;;  %v2250_v14 = vld [vmem:[%s3001_s3 + $0x28] sm:$0xff] (!%p493_p9)  }
  0x16   : > { %2092 = vmatpush3.bf16.msra.mxu0 (!%p493_p9), %v2242_v1  ;;  %2189 = vmatpush3.bf16.msra.mxu1 (!%p493_p9), %v2242_v1  ;;  %s579_s26 = sadd.s32 (!%p493_p9), 1, %s2472_s12  ;;  %v2516_v5 = vshrl.u32 (!%p493_p9), %v625_v4, 7  ;;  %s1929_s16 = sshll.u32 (!%p493_p9), %s2472_s12, 1  ;;  %v2247_v10 = vld [vmem:[%s3001_s3] sm:$0xff] (!%p493_p9)   ;;  %v2248_v18 = vld [vmem:[%s3001_s3 + $0x8] sm:$0xff] (!%p493_p9)  }
  0x17   : > { %2093 = vmatprep.subr.bf16.mxu0 (!%p493_p9), %v2361_v2  ;;  %2188 = vmatprep.subr.bf16.mxu1 (!%p493_p9), %v2361_v2  ;;  %p580_p11 = scmp.lt.s32.totalorder (!%p493_p9), %s579_s26, 1  ;;  %p2521_p0 = scmp.lt.s32.totalorder (!%p493_p9), %s1929_s16, 3 }
  0x18   : > { %2095 = vmatprep.mubr.msk.bf16.mxu0 (!%p493_p9), %vm2362_vm0, %v2361_v2  ;;  %2103 = vmatprep.mubr.msk.bf16.mxu1 (!%p493_p9), %vm2362_vm0, %v2361_v2  ;;  %v627_v6 = vadd.s32 (!%p493_p9), 8, %v2516_v5  ;;  %v628_v7 = vadd.s32 (!%p493_p9), 16, %v2516_v5  ;;  %vm735_vm2 = vcmp.lt.s32.totalorder (!%p493_p9), %v2516_v5, 1  ;;  %v629_v9 = vadd.s32 (!%p493_p9), 24, %v2516_v5  ;;  %s1941_s25 = sshll.u32 (!%p493_p9), %s2472_s12, 4  ;;  %s2038_s22 = sshll.u32 (!%p493_p9), %s2472_s12, 7 }
  0x19   : > { %v630_v11 = vadd.s32 (!%p493_p9), 32, %v2516_v5  ;;  %s1942_s21 = sadd.s32 (!%p493_p9), 4294967280, %s1941_s25  ;;  %v631_v22 = vadd.s32 (!%p493_p9), 40, %v2516_v5  ;;  %vm766_vm3 = vcmp.lt.s32.totalorder (!%p493_p9), %v2516_v5, 7  ;;  %s2365_s12 = smov (!%p493_p9), [#allocation3]  }
  0x1a   : > { %2094 = vmatpush3.bf16.msra.mxu0 (!%p493_p9), %v2243_v3  ;;  %2190 = vmatpush3.bf16.msra.mxu1 (!%p493_p9), %v2243_v3  ;;  %v632_v15 = vstv (!%p493_p9), %s1942_s21 }
  0x1b   : > { %2123 = vmatprep.subr.bf16.mxu0 (!%p493_p9), %v2361_v2  ;;  %2107 = vmatprep.subr.bf16.mxu1 (!%p493_p9), %v2361_v2  ;;  %v633_v19 = vadd.s32 (!%p493_p9), %v632_v15, %v2516_v5  ;;  %v634_v20 = vadd.s32 (!%p493_p9), %v632_v15, %v627_v6  ;;  %v2577_v29 = vadd.s32 (!%p493_p9), %v632_v15, %v628_v7 }
  0x1c   : > { %s3052_s24 = smov (!%p568_p10, %s1931_s24), 0  ;;  %s3054_s26 = smov (!%p580_p11, %s579_s26), 1  ;;  %v2579_v30 = vadd.s32 %v632_v15, %v629_v9  ;;  %v2583_v36 = vadd.s32 %v632_v15, %v630_v11  ;;  %v2585_v37 = vadd.s32 %v632_v15, %v631_v22 }
  0x1d   : > { %s1932_s27 = sshll.u32 %s3052_s24, 1  ;;  %s1934_s17 = sshll.u32 %s3054_s26, 1  ;;  %vm639_vm4 = vcmp.lt.s32.totalorder %v633_v19, 0  ;;  %v640_v32 = vsub.s32 0, %v633_v19  ;;  %v647_v33 = vsub.s32 0, %v634_v20  ;;  %vm646_vm5 = vcmp.lt.s32.totalorder %v634_v20, 0 }
  0x1e   : > { %p571_p12 = scmp.lt.s32.totalorder %s1932_s27, 3  ;;  %p583_p13 = scmp.lt.s32.totalorder %s1934_s17, 3  ;;  %v654_v43 = vsub.s32 0, %v2577_v29  ;;  %v661_v44 = vsub.s32 0, %v2579_v30  ;;  %vm653_vm6 = vcmp.lt.s32.totalorder %v2577_v29, 0  ;;  %vm660_vm7 = vcmp.lt.s32.totalorder %v2579_v30, 0 }
  0x1f   : > { %s3060_s16 = smov (!%p2521_p0, %s1929_s16), 3  ;;  %v1943_v38 = vmin.u32 %v640_v32, %v633_v19  ;;  %v1944_v39 = vmin.u32 %v647_v33, %v634_v20  ;;  %v668_v62 = vsub.s32 0, %v2583_v36  ;;  %v675_v9 = vsub.s32 0, %v2585_v37 }
  0x20   : > { %s3056_s27 = smov (!%p571_p12, %s1932_s27), 3  ;;  %s3058_s17 = smov (!%p583_p13, %s1934_s17), 3  ;;  %v1945_v49 = vmin.u32 %v654_v43, %v2577_v29  ;;  %v1946_v50 = vmin.u32 %v661_v44, %v2579_v30 }
  0x21   : > { %s1933_s26 = sshll.u32 %s3056_s27, 2  ;;  %s1935_s15 = sshll.u32 %s3058_s17, 2  ;;  %v643_v45 = vand.u32 15, %v1943_v38  ;;  %v650_v46 = vand.u32 15, %v1944_v39  ;;  %v1948_v29 = vmin.u32 %v675_v9, %v2585_v37 }
  0x22   : > { %s574_s23 = scalar_lea.vmem %s2999_s1, %s1933_s26  ;;  %s586_s29 = scalar_lea.vmem %s3000_s2, %s1935_s15  ;;  %v657_v55 = vand.u32 15, %v1945_v49  ;;  %v664_v56 = vand.u32 15, %v1946_v50 }
  0x23   : > { %v2244_v12 = vld [vmem:[%s574_s23] sm:$0xff]   ;;  %s1930_s15 = sshll.u32 %s3060_s16, 2  ;;  %v644_v51 = vsub.s32 0, %v643_v45  ;;  %v651_v52 = vsub.s32 0, %v650_v46  ;;  %v678_v39 = vand.u32 15, %v1948_v29  ;;  %s1937_s20 = sshll.u32 %s3060_s16, 3 }
  0x24   : > { %v2543_v13 = vld [vmem:[%s586_s29] sm:$0xff]   ;;  %v723_v16 = vunpack.c.l.bf16 %v2244_v12  ;;  %v724_v17 = vunpack.c.h.bf16 %v2244_v12  ;;  %2096 = vmatmul.mubr.msk.bf16.vlgmr.msra.gmra.mrb[0].mxu0 %vm815_vm1, %v2244_v12  ;;  %s565_s29 = scalar_lea.vmem %s2998_s0, %s1930_s15  ;;  %v658_v1 = vsub.s32 0, %v657_v55  ;;  %v665_v3 = vsub.s32 0, %v664_v56  ;;  %s595_s21 = scalar_lea.vmem %s3012_s14, %s1937_s20 }
  0x25   : > { %2124 = vmatpush3.bf16.msra.mxu0 %v2245_v8  ;;  %v728_v21 = vunpack.c.h.bf16 %v2543_v13  ;;  %2104 = vmatmul.mubr.msk.bf16.vlgmr.msra.gmra.mrb[0].mxu1 %vm815_vm1, %v2543_v13  ;;  %v727_v26 = vunpack.c.l.bf16 %v2543_v13  ;;  %v2249_v28 = vld [vmem:[%s565_s29] sm:$0xff]   ;;  %v645_v59 = vsel %vm639_vm4, %v644_v51, %v643_v45  ;;  %v652_v60 = vsel %vm646_vm5, %v651_v52, %v650_v46  ;;  %s3040_s27 = sld [smem:[#allocation7_spill]]  ;;  %s3042_s23 = sld [smem:[#allocation14_spill]] }
  0x26   : > { %v729_v23 = vrot.slane %v723_v16, 7  ;;  %v730_v24 = vrot.slane %v724_v17, 7  ;;  %v2562_v25 = vrot.slane %v723_v16, 1  ;;  %2108 = vmatpush3.bf16.msra.mxu1 %v2247_v10  ;;  %2099 = vmatprep.mubr.msk.bf16.mxu0 %vm2362_vm0, %v2361_v2  ;;  %v761_v31 = vrot.slane %v724_v17, 1  ;;  %s2301_s29 = sshll.u32 %s2365_s12, 4  ;;  %s2302_s29 = int_to_ptr.vmem [resolvable:$false] %s2301_s29 }
  0x27   : > { %v2573_v27 = vrot.slane %v728_v21, 7  ;;  %2109 = vmatprep.subr.bf16.mxu1 %v2361_v2  ;;  %2125 = vmatprep.subr.bf16.mxu0 %v2361_v2  ;;  %v725_v34 = vunpack.c.l.bf16 %v2249_v28  ;;  %v726_v35 = vunpack.c.h.bf16 %v2249_v28  ;;  %vm681_vm8 = vcmp.ne.s32.totalorder %v645_v59, 0  ;;  %s2303_s30 = scalar_lea.vmem %s2302_s29, 256 }
  0x28   : > { %2111 = vmatprep.mubr.msk.bf16.mxu1 %vm2362_vm0, %v2361_v2  ;;  %v740_v40 = vsel %vm735_vm2, %v729_v23, %v730_v24  ;;  %v771_v54 = vsel %vm766_vm3, %v2562_v25, %v761_v31  ;;  %vm682_vm9 = vcmp.ne.s32.totalorder %v652_v60, 0  ;;  %vm687_vm10 = vcmp.lt.s32.totalorder %v645_v59, 0 }
  0x29   : > { %2126 = vmatpush3.bf16.msra.mxu0 %v2250_v14  ;;  %v762_v41 = vrot.slane %v725_v34, 1  ;;  %v741_v42 = vsel %vm735_vm2, %v2573_v27, %v729_v23  ;;  %v731_v47 = vrot.slane %v725_v34, 7  ;;  %v2597_v48 = vrot.slane %v726_v35, 7  ;;  %vm693_vm12 = vmand %vm687_vm10, %vm681_vm8 }
  0x2a   : > { %2110 = vmatpush3.bf16.msra.mxu1 %v2248_v18  ;;  %2155 = vmatprep.subr.bf16.mxu0 %v2361_v2  ;;  %v763_v58 = vrot.slane %v726_v35, 1  ;;  %vm688_vm11 = vcmp.lt.s32.totalorder %v652_v60, 0  ;;  %v699_v63 = vadd.s32 16, %v645_v59  ;;  %v700_v0 = vadd.s32 16, %v652_v60 }
  0x2b   : > { %2139 = vmatprep.subr.bf16.mxu1 %v2361_v2  ;;  %v770_v53 = vsel %vm766_vm3, %v761_v31, %v762_v41  ;;  %v738_v57 = vsel %vm735_vm2, %v731_v47, %v2597_v48  ;;  %v739_v61 = vsel %vm735_vm2, %v730_v24, %v731_v47  ;;  %vm694_vm13 = vmand %vm688_vm11, %vm682_vm9  ;;  %v2620_v6 = vrot.slane %v727_v26, 1  ;;  %s558_s17 = sand.u32 1, %s3040_s27   ;;  %s3043_s15 = smov %s3042_s23 }
  0x2c   : > { %2100 = vmatmul.mubr.msk.bf16.gmra.mrb[4].mxu0 %vm815_vm1, %v2249_v28  ;;  %v769_v7 = vsel %vm766_vm3, %v762_v41, %v763_v58  ;;  %v1947_v8 = vmin.u32 %v668_v62, %v2583_v36  ;;  %v2626_v10 = vsel %vm693_vm12, %v699_v63, %v645_v59  ;;  %v2628_v11 = vsel %vm694_vm13, %v700_v0, %v652_v60  ;;  %s1928_s18 = sshll.u32 %s558_s17, 3  ;;  %s2957_s16 = scalar_lea.sflag [#allocation4], %s558_s17 }
  0x2d   : > { %2127 = vmatprep.mubr.msk.bf16.mxu0 %vm2362_vm0, %v2361_v2  ;;  %v659_v12 = vsel %vm653_vm6, %v658_v1, %v657_v55  ;;  %v666_v14 = vsel %vm660_vm7, %v665_v3, %v664_v56  ;;  %vm711_vm14 = vcmp.ne.s32.totalorder %v2626_v10, 0  ;;  %vm712_vm15 = vcmp.ne.s32.totalorder %v2628_v11, 0  ;;  %s560_s26 = scalar_lea.vmem [#allocation3], %s1928_s18 }
  0x2e   : > { %vm717_vm4 = vcmp.ne.s32.totalorder %v2626_v10, 15  ;;  %vm718_vm5 = vcmp.ne.s32.totalorder %v2628_v11, 15  ;;  %v754_v15 = vsel %vm711_vm14, %v741_v42, 0.0  ;;  %v755_v16 = vsel %vm712_vm15, %v740_v40, 0.0  ;;  %s1811_s24 = sshll.u32 %s560_s26, 4  ;;  %s2950_s24 = int_to_ptr.vmem [resolvable:$true] %s1811_s24 }
  0x2f   : > { %v785_v17 = vsel %vm717_vm4, %v771_v54, 0.0  ;;  %v786_v18 = vsel %vm718_vm5, %v770_v53, 0.0  ;;  %v791_v19 = vpack.c.bf16 %v755_v16, %v754_v15  ;;  %vm683_vm6 = vcmp.ne.s32.totalorder %v659_v12, 0  ;;  %s2297_s25 = scalar_lea.vmem %s2950_s24, 128  ;;  %p2304_p4 = scmp.lt.s32.totalorder %s2950_s24, %s2302_s29 }
  0x30   : > { %v960_v20 = vpack.c.bf16 %v786_v18, %v785_v17  ;;  %vm684_vm7 = vcmp.ne.s32.totalorder %v666_v14, 0  ;;  %vm689_vm8 = vcmp.lt.s32.totalorder %v659_v12, 0  ;;  %vm690_vm9 = vcmp.lt.s32.totalorder %v666_v14, 0  ;;  %p2298_p1 = scmp.ne.s32.totalorder %s2950_s24, %s2297_s25  ;;  %p2305_p7 = scmp.lt.s32.totalorder %s2303_s30, %s2297_s25 }
  0x31   : > { %v701_v22 = vadd.s32 16, %v659_v12  ;;  %v702_v23 = vadd.s32 16, %v666_v14  ;;  %2112 = vmatmul.mubr.msk.bf16.vlgmr.msra.gmra.mrb[4].mxu1 %vm815_vm1, %v791_v19  ;;  %vm695_vm10 = vmand %vm689_vm8, %vm683_vm6  ;;  %v768_v24 = vsel %vm766_vm3, %v763_v58, %v2620_v6  ;;  %vm667_vm11 = vcmp.lt.s32.totalorder %v2583_v36, 0 }
  0x32   : > { %v671_v28 = vand.u32 15, %v1947_v8  ;;  %2115 = vmatprep.mubr.msk.bf16.mxu1 %vm2362_vm0, %v2361_v2  ;;  %vm696_vm12 = vmand %vm690_vm9, %vm684_vm7  ;;  %vm674_vm13 = vcmp.lt.s32.totalorder %v2585_v37, 0  ;;  %v733_v31 = vrot.slane %v727_v26, 7  ;;  %v765_v32 = vrot.slane %v728_v21, 1  ;;  %p2299_p2 = pnand %p2298_p1, %p2489_p5  ;;  %p2306_p8 = por %p2305_p7, %p2304_p4 }
  0x33   : > { %v2655_v30 = vsel %vm695_vm10, %v701_v22, %v659_v12  ;;  %v2664_v33 = vsel %vm696_vm12, %v702_v23, %v666_v14  ;;  %v679_v42 = vsub.s32 0, %v678_v39  ;;  %v1972_v14 = vld [vmem:[%s3002_s4] ss:$0 sm:$0xff] }
  0x34   : > { %2128 = vmatmul.mubr.msk.bf16.vlgmr.msra.gmra.mrb[8].mxu0 %vm815_vm1, %v960_v20  ;;  %vm3024_vm6 = vcmp.ne.s32.totalorder %v2655_v30, 0  ;;  %vm3025_vm8 = vcmp.ne.s32.totalorder %v2655_v30, 15  ;;  %v672_v34 = vsub.s32 0, %v671_v28  ;;  %vm714_vm7 = vcmp.ne.s32.totalorder %v2664_v33, 0  ;;  %p2300_p3 = pneg %p2299_p2 }
  0x35   : > { %2131 = vmatprep.mubr.msk.bf16.mxu0 %vm2362_vm0, %v2361_v2  ;;  %v756_v35 = vsel %vm3024_vm6, %v739_v61, 0.0  ;;  %vm720_vm9 = vcmp.ne.s32.totalorder %v2664_v33, 15  ;;  %v787_v26 = vsel %vm3025_vm8, %v769_v7, 0.0  ;;  %v757_v13 = vsel %vm714_vm7, %v738_v57, 0.0 }
  0x36   : > { %v788_v21 = vsel %vm720_vm9, %v768_v24, 0.0  ;;  %v673_v38 = vsel %vm667_vm11, %v672_v34, %v671_v28  ;;  %v792_v40 = vpack.c.bf16 %v757_v13, %v756_v35  ;;  %v737_v44 = vsel %vm735_vm2, %v2597_v48, %v733_v31  ;;  %p2307_p9 = pnand %p2306_p8, %p2300_p3 }
  0x37   : > { %v961_v41 = vpack.c.bf16 %v788_v21, %v787_v26  ;;  %vm685_vm10 = vcmp.ne.s32.totalorder %v673_v38, 0  ;;  %vm691_vm12 = vcmp.lt.s32.totalorder %v673_v38, 0  ;;  %v703_v43 = vadd.s32 16, %v673_v38 }
  0x38   : > { %vm697_vm6 = vmand %vm691_vm12, %vm685_vm10  ;;  %v680_v36 = vsel %vm674_vm13, %v679_v42, %v678_v39  ;;  %v767_v46 = vsel %vm766_vm3, %v2620_v6, %v765_v32  ;;  %v736_v37 = vsel %vm735_vm2, %v733_v31, %v2573_v27  ;;  %v772_v48 = vsel %vm766_vm3, %v765_v32, %v2562_v25 }
  0x39   : > { %2116 = vmatmul.mubr.msk.bf16.gmra.mrb[8].mxu1 %vm815_vm1, %v792_v40  ;;  %v2687_v45 = vsel %vm697_vm6, %v703_v43, %v673_v38  ;;  %vm686_vm11 = vcmp.ne.s32.totalorder %v680_v36, 0  ;;  %vm692_vm10 = vcmp.lt.s32.totalorder %v680_v36, 0  ;;  %v704_v47 = vadd.s32 16, %v680_v36 }
  0x3a   : > { %2119 = vmatprep.mubr.msk.bf16.mxu1 %vm2362_vm0, %v2361_v2  ;;  %vm715_vm12 = vcmp.ne.s32.totalorder %v2687_v45, 0  ;;  %vm698_vm8 = vmand %vm692_vm10, %vm686_vm11  ;;  %vm721_vm13 = vcmp.ne.s32.totalorder %v2687_v45, 15 }
  0x3b   : > { %v2704_v49 = vsel %vm698_vm8, %v704_v47, %v680_v36  ;;  %v758_v50 = vsel %vm715_vm12, %v737_v44, 0.0  ;;  %v789_v51 = vsel %vm721_vm13, %v767_v46, 0.0 }
  0x3c   : > { %2132 = vmatmul.mubr.msk.bf16.gmra.mrb[12].mxu0 %vm815_vm1, %v961_v41  ;;  %vm716_vm6 = vcmp.ne.s32.totalorder %v2704_v49, 0  ;;  %vm722_vm11 = vcmp.ne.s32.totalorder %v2704_v49, 15 }
  0x3d   : > { %2135 = vmatprep.mubr.msk.bf16.mxu0 %vm2362_vm0, %v2361_v2  ;;  %v759_v27 = vsel %vm716_vm6, %v736_v37, 0.0  ;;  %v790_v52 = vsel %vm722_vm11, %v772_v48, 0.0 }
  0x3e   : > { %v793_v53 = vpack.c.bf16 %v759_v27, %v758_v50  ;;  %v962_v25 = vpack.c.bf16 %v790_v52, %v789_v51 }
  0x41   : > { %2120 = vmatmul.mubr.msk.bf16.gmra.mrb[12].mxu1 %vm815_vm1, %v793_v53 }
  0x42   : > { %2143 = vmatprep.mubr.msk.bf16.mxu1 %vm2362_vm0, %v2361_v2 }
  0x44   : > { %2136 = vmatmul.mubr.msk.bf16.gmra.mrb[16].mxu0 %vm815_vm1, %v962_v25 }
  0x45   : > { %2159 = vmatprep.mubr.msk.bf16.mxu0 %vm2362_vm0, %v2361_v2 }
  0xf7   : > { %v859_v54 = vpop.f32.mrb[0].mxu0 }
  0xf8   : > { %v2097_v55 = vpop.f32.mrb[1].mxu0  ;;  %v875_v56 = vpop.f32.mrb[0].mxu1 }
  0xf9   : > { %v862_v57 = vpop.f32.mrb[2].mxu0  ;;  %v2105_v58 = vpop.f32.mrb[1].mxu1 }
  0xfa   : > { %v2098_v59 = vpop.f32.mrb[3].mxu0  ;;  %v878_v60 = vpop.f32.mrb[2].mxu1 }
  0xfb   : > { %v2106_v61 = vpop.f32.mrb[3].mxu1 }
  0xff   : > { %v867_v62 = vpop.f32.mrb[4].mxu0 }
 0x100   : > { %v2101_v63 = vpop.f32.mrb[5].mxu0 }
 0x101   : > { %v870_v0 = vpop.f32.mrb[6].mxu0 }
 0x102   : > { %v2102_v1 = vpop.f32.mrb[7].mxu0 }
 0x104   : > { %v937_v3 = vpop.f32.mrb[4].mxu1 }
 0x105   : > { %v938_v7 = vadd.f32 %v937_v3, %v859_v54  ;;  %v2113_v8 = vpop.f32.mrb[5].mxu1 }
 0x106   : > { %v940_v12 = vpop.f32.mrb[6].mxu1 }
 0x107   : > { %v1023_v6 = vpop.f32.mrb[8].mxu0  ;;  %v941_v16 = vadd.f32 %v940_v12, %v862_v57  ;;  %v2114_v17 = vpop.f32.mrb[7].mxu1 }
 0x108   : > { %v2129_v9 = vpop.f32.mrb[9].mxu0  ;;  %v1046_v18 = vadd.f32 %v1023_v6, %v938_v7  ;;  %v2255_v17 = vld [vmem:[%s3005_s7 + $0x8] sm:$0xff]  }
 0x109   : > { %v1026_v15 = vpop.f32.mrb[10].mxu0 }
 0x10a   : > { %v2130_v19 = vpop.f32.mrb[11].mxu0  ;;  %v2725_v20 = vadd.f32 %v1972_v14, %v1046_v18  ;;  %v1047_v22 = vadd.f32 %v1026_v15, %v941_v16  ;;  %v2252_v15 = vld [vmem:[%s3005_s7 + $0x18] sm:$0xff]   ;;  %v2253_v16 = vld [vmem:[%s3005_s7] sm:$0xff]  }
 0x10b   : > { %2156 = vmatpush3.bf16.msra.mxu0 %v2253_v16 }
 0x10c   : > { %v2727_v23 = vadd.f32 %v1972_v14, %v1047_v22  ;;  %v1065_v24 = vsel %vm815_vm1, %v2725_v20, 0.0  ;;  %v1090_v28 = vmul.f32 %v2725_v20, %v2725_v20  ;;  %v945_v29 = vpop.f32.mrb[8].mxu1  ;;  %2157 = vmatprep.subr.bf16.mxu0 %v2361_v2 }
 0x10d   : > { %1066 = vadd.xlane.f32.xlu0 %v1065_v24  ;;  %v946_v32 = vadd.f32 %v945_v29, %v867_v62  ;;  %v2117_v34 = vpop.f32.mrb[9].mxu1 }
 0x10e   : > { %v1096_v35 = vsel %vm815_vm1, %v1090_v28, 0.0  ;;  %v1091_v13 = vmul.f32 %v2727_v23, %v2727_v23  ;;  %v948_v21 = vpop.f32.mrb[10].mxu1  ;;  %v1068_v42 = vsel %vm815_vm1, %v2727_v23, 0.0 }
 0x10f   : > { %v1031_v31 = vpop.f32.mrb[12].mxu0  ;;  %1097 = vadd.xlane.f32.xlu1 %v1096_v35  ;;  %v949_v39 = vadd.f32 %v948_v21, %v870_v0  ;;  %v2118_v40 = vpop.f32.mrb[11].mxu1  ;;  %2158 = vmatpush3.bf16.msra.mxu0 %v2255_v17 }
 0x110   : > { %v2133_v26 = vpop.f32.mrb[13].mxu0  ;;  %v1048_v41 = vadd.f32 %v1031_v31, %v946_v32  ;;  %v1099_v46 = vsel %vm815_vm1, %v1091_v13, 0.0 }
 0x111   : > { %v1034_v38 = vpop.f32.mrb[14].mxu0  ;;  %1069 = vadd.xlane.f32.xlu0 %v1068_v42 }
 0x112   : > { %v2134_v43 = vpop.f32.mrb[15].mxu0  ;;  %v2738_v44 = vadd.f32 %v1972_v14, %v1048_v41  ;;  %v1049_v36 = vadd.f32 %v1034_v38, %v949_v39 }
 0x113   : > { %1100 = vadd.xlane.f32.xlu1 %v1099_v46 }
 0x114   : > { %v2741_v47 = vadd.f32 %v1972_v14, %v1049_v36  ;;  %v1071_v37 = vsel %vm815_vm1, %v2738_v44, 0.0  ;;  %v1092_v48 = vmul.f32 %v2738_v44, %v2738_v44  ;;  %v953_v50 = vpop.f32.mrb[12].mxu1 }
 0x115   : > { %1072 = vadd.xlane.f32.xlu0 %v1071_v37  ;;  %v954_v27 = vadd.f32 %v953_v50, %v875_v56  ;;  %v2121_v52 = vpop.f32.mrb[13].mxu1 }
 0x116   : > { %v1074_v53 = vsel %vm815_vm1, %v2741_v47, 0.0  ;;  %v1093_v54 = vmul.f32 %v2741_v47, %v2741_v47  ;;  %v956_v55 = vpop.f32.mrb[14].mxu1  ;;  %v1102_v62 = vsel %vm815_vm1, %v1092_v48, 0.0 }
 0x117   : > { %v1039_v51 = vpop.f32.mrb[16].mxu0  ;;  %1075 = vadd.xlane.f32.xlu1 %v1074_v53  ;;  %v957_v58 = vadd.f32 %v956_v55, %v878_v60  ;;  %v2122_v59 = vpop.f32.mrb[15].mxu1 }
 0x118   : > { %v2137_v25 = vpop.f32.mrb[17].mxu0  ;;  %v1050_v61 = vadd.f32 %v1039_v51, %v954_v27  ;;  %v1105_v1 = vsel %vm815_vm1, %v1093_v54, 0.0 }
 0x119   : > { %v1042_v57 = vpop.f32.mrb[18].mxu0  ;;  %1103 = vadd.xlane.f32.xlu0 %v1102_v62 }
 0x11a   : > { %v2138_v63 = vpop.f32.mrb[19].mxu0  ;;  %v2752_v0 = vadd.f32 %v1972_v14, %v1050_v61  ;;  %v1051_v56 = vadd.f32 %v1042_v57, %v957_v58 }
 0x11b   : > { %1106 = vadd.xlane.f32.xlu1 %v1105_v1  ;;  %v1973_v1 = vld [vmem:[%s3003_s5] ss:$0 sm:$0xff] }
 0x11c   : > { %v2755_v3 = vadd.f32 %v1972_v14, %v1051_v56  ;;  %v1077_v6 = vsel %vm815_vm1, %v2752_v0, 0.0  ;;  %v1094_v60 = vmul.f32 %v2752_v0, %v2752_v0  ;;  %v2251_v14 = vld [vmem:[%s3005_s7 + $0x10] sm:$0xff]  }
 0x11d   : > { %1078 = vadd.xlane.f32.xlu0 %v1077_v6  ;;  %2140 = vmatpush3.bf16.msra.mxu1 %v2251_v14 }
 0x11e   : > { %v1080_v7 = vsel %vm815_vm1, %v2755_v3, 0.0  ;;  %v1095_v8 = vmul.f32 %v2755_v3, %v2755_v3  ;;  %v1108_v9 = vsel %vm815_vm1, %v1094_v60, 0.0  ;;  %2141 = vmatprep.subr.bf16.mxu1 %v2361_v2 }
 0x11f   : > { %1081 = vadd.xlane.f32.xlu1 %v1080_v7 }
 0x120   : > { %v1111_v12 = vsel %vm815_vm1, %v1095_v8, 0.0 }
 0x121   : > { %1109 = vadd.xlane.f32.xlu0 %v1108_v9  ;;  %2142 = vmatpush3.bf16.msra.mxu1 %v2252_v15 }
 0x122   : > { %2171 = vmatprep.subr.bf16.mxu1 %v2361_v2 }
 0x123   : > { %1112 = vadd.xlane.f32.xlu1 %v1111_v12 }
 0x19a   : > { %v1067_v18 = vpop.xlane.xlu0 %1066 }
 0x19b   : > { %v1084_v19 = vmul.f32 0.03125, %v1067_v18  ;;  %v1974_v18 = vld [vmem:[%s3004_s6] ss:$0 sm:$0xff] }
 0x19c   : > { %v1098_v22 = vpop.xlane.xlu1 %1097 }
 0x19d   : > { %v1120_v24 = vmul.f32 %v1084_v19, %v1084_v19  ;;  %v1114_v28 = vmul.f32 0.03125, %v1098_v22  ;;  %v1138_v61 = vsub.f32 %v2725_v20, %v1084_v19 }
 0x19e   : > { %v1070_v29 = vpop.xlane.xlu0 %1069 }
 0x19f   : > { %v1126_v31 = vsub.f32 %v1114_v28, %v1120_v24  ;;  %v1085_v32 = vmul.f32 0.03125, %v1070_v29 }
 0x1a0   : > { %v1101_v34 = vpop.xlane.xlu1 %1100 }
 0x1a1   : > { %v1132_v35 = vmax.f32 %v1126_v31, 0.0  ;;  %v1121_v26 = vmul.f32 %v1085_v32, %v1085_v32  ;;  %v1115_v13 = vmul.f32 0.03125, %v1101_v34  ;;  %v1139_v20 = vsub.f32 %v2727_v23, %v1085_v32 }
 0x1a2   : > { %v1073_v21 = vpop.xlane.xlu0 %1072 }
 0x1a3   : > { %v1144_v38 = vadd.f32 1e-05, %v1132_v35  ;;  %v1127_v39 = vsub.f32 %v1115_v13, %v1121_v26  ;;  %v1086_v40 = vmul.f32 0.03125, %v1073_v21 }
 0x1a4   : > { %v1076_v41 = vpop.xlane.xlu1 %1075 }
 0x1a5   : > { %2273 = vrsqrt.f32 %v1144_v38  ;;  %v1133_v42 = vmax.f32 %v1127_v39, 0.0  ;;  %v1087_v43 = vmul.f32 0.03125, %v1076_v41  ;;  %v1122_v37 = vmul.f32 %v1086_v40, %v1086_v40 }
 0x1a6   : > { %v1104_v36 = vpop.xlane.xlu0 %1103  ;;  %v1140_v13 = vsub.f32 %v2738_v44, %v1086_v40 }
 0x1a7   : > { %v1145_v46 = vadd.f32 1e-05, %v1133_v42  ;;  %v1116_v48 = vmul.f32 0.03125, %v1104_v36  ;;  %v1123_v51 = vmul.f32 %v1087_v43, %v1087_v43  ;;  %v1141_v38 = vsub.f32 %v2741_v47, %v1087_v43  ;;  %v2254_v42 = vld [vmem:[%s3005_s7 + $0x20] sm:$0xff]   ;;  %v2256_v47 = vld [vmem:[%s3005_s7 + $0x28] sm:$0xff]  }
 0x1a8   : > { %v1107_v50 = vpop.xlane.xlu1 %1106 }
 0x1a9   : > { %2275 = vrsqrt.f32 %v1145_v46  ;;  %v1128_v27 = vsub.f32 %v1116_v48, %v1122_v37  ;;  %v1117_v52 = vmul.f32 0.03125, %v1107_v50 }
 0x1aa   : > { %v1079_v53 = vpop.xlane.xlu0 %1078 }
 0x1ab   : > { %v1134_v25 = vmax.f32 %v1128_v27, 0.0  ;;  %v1129_v54 = vsub.f32 %v1117_v52, %v1123_v51  ;;  %v1088_v55 = vmul.f32 0.03125, %v1079_v53 }
 0x1ac   : > { %v1082_v57 = vpop.xlane.xlu1 %1081 }
 0x1ad   : > { %v1146_v58 = vadd.f32 1e-05, %v1134_v25  ;;  %v1135_v59 = vmax.f32 %v1129_v54, 0.0  ;;  %v1089_v62 = vmul.f32 0.03125, %v1082_v57  ;;  %v1124_v60 = vmul.f32 %v1088_v55, %v1088_v55 }
 0x1ae   : > { %v1110_v63 = vpop.xlane.xlu0 %1109  ;;  %v1142_v43 = vsub.f32 %v2752_v0, %v1088_v55 }
 0x1af   : > { %v2274_v56 = vpop.eup %2273  ;;  %2277 = vrsqrt.f32 %v1146_v58  ;;  %v1147_v6 = vadd.f32 1e-05, %v1135_v59  ;;  %v1118_v7 = vmul.f32 0.03125, %v1110_v63  ;;  %v1125_v12 = vmul.f32 %v1089_v62, %v1089_v62 }
 0x1b0   : > { %v1156_v8 = vmul.f32 %v2274_v56, %v1138_v61  ;;  %v1113_v9 = vpop.xlane.xlu1 %1112  ;;  %v1143_v51 = vsub.f32 %v2755_v3, %v1089_v62 }
 0x1b1   : > { %2279 = vrsqrt.f32 %v1147_v6  ;;  %v1130_v14 = vsub.f32 %v1118_v7, %v1124_v60  ;;  %v1119_v15 = vmul.f32 0.03125, %v1113_v9 }
 0x1b2   : > { %v1169_v16 = vmul.f32 %v1973_v1, %v1156_v8 }
 0x1b3   : > { %v2276_v17 = vpop.eup %2275  ;;  %v1136_v19 = vmax.f32 %v1130_v14, 0.0  ;;  %v1131_v22 = vsub.f32 %v1119_v15, %v1125_v12 }
 0x1b4   : > { %v1157_v24 = vmul.f32 %v2276_v17, %v1139_v20  ;;  %v1182_v31 = vadd.f32 %v1974_v18, %v1169_v16 }
 0x1b5   : > { %v1148_v28 = vadd.f32 1e-05, %v1136_v19  ;;  %v1137_v29 = vmax.f32 %v1131_v22, 0.0 }
 0x1b6   : > { %v1170_v34 = vmul.f32 %v1973_v1, %v1157_v24  ;;  %v2791_v23 = vmax.f32 %v1182_v31, 0.0 }
 0x1b7   : > { %2281 = vrsqrt.f32 %v1148_v28  ;;  %v1149_v35 = vadd.f32 1e-05, %v1137_v29 }
 0x1b8   : > { %v1183_v26 = vadd.f32 %v1974_v18, %v1170_v34  ;;  %v1194_v62 = vrot.slane %v2791_v23, 7  ;;  %v1212_v9 = vrot.slane %v2791_v23, 1 }
 0x1b9   : > { %v2278_v21 = vpop.eup %2277  ;;  %2283 = vrsqrt.f32 %v1149_v35 }
 0x1ba   : > { %v1189_v32 = vmax.f32 %v1183_v26, 0.0  ;;  %v1158_v39 = vmul.f32 %v2278_v21, %v1140_v13 }
 0x1bb   : > { %v2280_v41 = vpop.eup %2279 }
 0x1bc   : > { %v1159_v36 = vmul.f32 %v2280_v41, %v1141_v38  ;;  %v1237_v46 = vpack.c.bf16 %v1189_v32, %v2791_v23  ;;  %v1171_v37 = vmul.f32 %v1973_v1, %v1158_v39  ;;  %v1195_v55 = vrot.slane %v1189_v32, 7 }
 0x1bd   : > { %v1213_v8 = vrot.slane %v1189_v32, 1 }
 0x1be   : > { %2144 = vmatmul.mubr.msk.bf16.vlgmr.msra.gmra.mrb[16].mxu1 %vm815_vm1, %v1237_v46  ;;  %v1172_v44 = vmul.f32 %v1973_v1, %v1159_v36  ;;  %v1184_v40 = vadd.f32 %v1974_v18, %v1171_v37  ;;  %v1204_v7 = vsel %vm735_vm2, %v1194_v62, %v1195_v55 }
 0x1bf   : > { %2172 = vmatpush3.bf16.msra.mxu1 %v2254_v42  ;;  %2147 = vmatprep.mubr.msk.bf16.mxu1 %vm2362_vm0, %v2361_v2  ;;  %v1207_v16 = vsel %vm712_vm15, %v1204_v7, 0.0  ;;  %v1222_v17 = vsel %vm766_vm3, %v1212_v9, %v1213_v8  ;;  %vm3039_vm15 = vcmp.ne.s32.totalorder %v2655_v30, 15 }
 0x1c0   : > { %v1185_v48 = vadd.f32 %v1974_v18, %v1172_v44  ;;  %2173 = vmatprep.subr.bf16.mxu1 %v2361_v2  ;;  %v1190_v52 = vmax.f32 %v1184_v40, 0.0  ;;  %v1224_v28 = vsel %vm717_vm4, %v1222_v17, 0.0 }
 0x1c1   : > { %v2282_v50 = vpop.eup %2281 }
 0x1c2   : > { %v1160_v27 = vmul.f32 %v2282_v50, %v1142_v43  ;;  %v1191_v53 = vmax.f32 %v1185_v48, 0.0  ;;  %v1214_v63 = vrot.slane %v1190_v52, 1 }
 0x1c3   : > { %v2284_v25 = vpop.eup %2283  ;;  %2174 = vmatpush3.bf16.msra.mxu1 %v2256_v47 }
 0x1c4   : > { %v1161_v54 = vmul.f32 %v2284_v25, %v1143_v51  ;;  %v1238_v57 = vpack.c.bf16 %v1191_v53, %v1190_v52  ;;  %v1173_v58 = vmul.f32 %v1973_v1, %v1160_v27  ;;  %v1221_v12 = vsel %vm766_vm3, %v1213_v8, %v1214_v63 }
 0x1c5   : > { %v1197_v14 = vrot.slane %v1191_v53, 7  ;;  %v1225_v19 = vsel %vm718_vm5, %v1221_v12, 0.0  ;;  %v1215_v34 = vrot.slane %v1191_v53, 1 }
 0x1c6   : > { %2148 = vmatmul.mubr.msk.bf16.gmra.mrb[20].mxu1 %vm815_vm1, %v1238_v57  ;;  %v1174_v59 = vmul.f32 %v1973_v1, %v1161_v54  ;;  %v1186_v61 = vadd.f32 %v1974_v18, %v1173_v58  ;;  %v1393_v29 = vpack.c.bf16 %v1225_v19, %v1224_v28 }
 0x1c7   : > { %2151 = vmatprep.mubr.msk.bf16.mxu1 %vm2362_vm0, %v2361_v2  ;;  %v1220_v13 = vsel %vm766_vm3, %v1214_v63, %v1215_v34 }
 0x1c8   : > { %v1187_v0 = vadd.f32 %v1974_v18, %v1174_v59  ;;  %v1192_v56 = vmax.f32 %v1186_v61, 0.0  ;;  %v1196_v18 = vrot.slane %v1190_v52, 7  ;;  %v1226_v39 = vsel %vm3039_vm15, %v1220_v13, 0.0 }
 0x1ca   : > { %v1193_v3 = vmax.f32 %v1187_v0, 0.0  ;;  %v1202_v22 = vsel %vm735_vm2, %v1196_v18, %v1197_v14  ;;  %v1216_v24 = vrot.slane %v1192_v56, 1  ;;  %v1203_v31 = vsel %vm735_vm2, %v1195_v55, %v1196_v18 }
 0x1cb   : > { %v1209_v11 = vsel %vm714_vm7, %v1202_v22, 0.0  ;;  %v1198_v21 = vrot.slane %v1192_v56, 7  ;;  %vm1785_vm7 = vcmask 257024  }
 0x1cc   : > { %v1199_v6 = vrot.slane %v1193_v3, 7  ;;  %v1239_v60 = vpack.c.bf16 %v1193_v3, %v1192_v56  ;;  %v1219_v35 = vsel %vm766_vm3, %v1215_v34, %v1216_v24  ;;  %v1217_v38 = vrot.slane %v1193_v3, 1 }
 0x1cd   : > { %v1227_v23 = vsel %vm720_vm9, %v1219_v35, 0.0  ;;  %v1201_v42 = vsel %vm735_vm2, %v1197_v14, %v1198_v21 }
 0x1ce   : > { %2152 = vmatmul.mubr.msk.bf16.gmra.mrb[24].mxu1 %vm815_vm1, %v1239_v60  ;;  %v1205_v1 = vsel %vm735_vm2, %v1199_v6, %v1194_v62  ;;  %v1200_v32 = vsel %vm735_vm2, %v1198_v21, %v1199_v6  ;;  %v1394_v41 = vpack.c.bf16 %v1227_v23, %v1226_v39  ;;  %v1218_v36 = vsel %vm766_vm3, %v1216_v24, %v1217_v38 }
 0x1cf   : > { %v1206_v15 = vsel %vm711_vm14, %v1205_v1, 0.0  ;;  %2175 = vmatprep.mubr.msk.bf16.mxu1 %vm2362_vm0, %v2361_v2  ;;  %vm3038_vm14 = vcmp.ne.s32.totalorder %v2655_v30, 0  ;;  %v1211_v33 = vsel %vm716_vm6, %v1200_v32, 0.0  ;;  %v1223_v46 = vsel %vm766_vm3, %v1217_v38, %v1212_v9  ;;  %v1998_v1 = vld [vmem:[%s3006_s8] ss:$0 sm:$0xff] }
 0x1d0   : > { %v1230_v20 = vpack.c.bf16 %v1207_v16, %v1206_v15  ;;  %v1208_v10 = vsel %vm3038_vm14, %v1203_v31, 0.0  ;;  %v1210_v30 = vsel %vm715_vm12, %v1201_v42, 0.0  ;;  %v1228_v44 = vsel %vm721_vm13, %v1218_v36, 0.0 }
 0x1d1   : > { %v1231_v26 = vpack.c.bf16 %v1209_v11, %v1208_v10  ;;  %v1232_v37 = vpack.c.bf16 %v1211_v33, %v1210_v30  ;;  %v1229_v40 = vsel %vm722_vm11, %v1223_v46, 0.0 }
 0x1d2   : > { %2160 = vmatmul.mubr.msk.bf16.vlgmr.msra.gmra.mrb[20].mxu0 %vm815_vm1, %v1230_v20  ;;  %v1395_v47 = vpack.c.bf16 %v1229_v40, %v1228_v44 }
 0x1d3   : > { %2163 = vmatprep.mubr.msk.bf16.mxu0 %vm2362_vm0, %v2361_v2 }
 0x1d6   : > { %2176 = vmatmul.mubr.msk.bf16.vlgmr.msra.gmra.mrb[28].mxu1 %vm815_vm1, %v1393_v29 }
 0x1d7   : > { %2179 = vmatprep.mubr.msk.bf16.mxu1 %vm2362_vm0, %v2361_v2 }
 0x1da   : > { %2164 = vmatmul.mubr.msk.bf16.gmra.mrb[24].mxu0 %vm815_vm1, %v1231_v26 }
 0x1db   : > { %2167 = vmatprep.mubr.msk.bf16.mxu0 %vm2362_vm0, %v2361_v2 }
 0x1de   : > { %2180 = vmatmul.mubr.msk.bf16.gmra.mrb[32].mxu1 %vm815_vm1, %v1394_v41 }
 0x1df   : > { %2183 = vmatprep.mubr.msk.bf16.mxu1 %vm2362_vm0, %v2361_v2  ;;  %vm1564_vm0 = vcmask 7168  }
 0x1e2   : > { %2168 = vmatmul.mubr.msk.bf16.gmra.mrb[28].mxu0 %vm815_vm1, %v1232_v37 }
 0x1e6   : > { %2184 = vmatmul.mubr.msk.bf16.gmra.mrb[36].mxu1 %vm815_vm1, %v1395_v47 }
 0x291   : > { %v1300_v5 = vpop.f32.mrb[16].mxu1 }
 0x292   : > { %v2145_v43 = vpop.f32.mrb[17].mxu1 }
 0x293   : > { %v1302_v48 = vpop.f32.mrb[18].mxu1 }
 0x294   : > { %v2146_v50 = vpop.f32.mrb[19].mxu1 }
 0x299   : > { %v1306_v51 = vpop.f32.mrb[20].mxu1 }
 0x29a   : > { %v2149_v27 = vpop.f32.mrb[21].mxu1 }
 0x29b   : > { %v1309_v52 = vpop.f32.mrb[22].mxu1 }
 0x29c   : > { %v2150_v2 = vpop.f32.mrb[23].mxu1 }
 0x2a1   : > { %v1314_v53 = vpop.f32.mrb[24].mxu1 }
 0x2a2   : > { %v2153_v25 = vpop.f32.mrb[25].mxu1  ;;  %v2000_v53 = vld [vmem:[%s3008_s10] ss:$0 sm:$0xff] }
 0x2a3   : > { %v1316_v45 = vpop.f32.mrb[26].mxu1 }
 0x2a4   : > { %v2154_v54 = vpop.f32.mrb[27].mxu1 }
 0x2a5   : > { %v1374_v57 = vpop.f32.mrb[20].mxu0 }
 0x2a6   : > { %v2161_v49 = vpop.f32.mrb[21].mxu0 }
 0x2a7   : > { %v1376_v58 = vpop.f32.mrb[22].mxu0  ;;  %v2001_v49 = vld [vmem:[%s3009_s11] ss:$0 sm:$0xff] }
 0x2a8   : > { %v2162_v59 = vpop.f32.mrb[23].mxu0 }
 0x2a9   : > { %v1456_v61 = vpop.f32.mrb[28].mxu1 }
 0x2aa   : > { %v2177_v0 = vpop.f32.mrb[29].mxu1 }
 0x2ab   : > { %v1458_v55 = vpop.f32.mrb[30].mxu1 }
 0x2ac   : > { %v2178_v63 = vpop.f32.mrb[31].mxu1 }
 0x2ad   : > { %v1380_v56 = vpop.f32.mrb[24].mxu0 }
 0x2ae   : > { %v1381_v3 = vadd.f32 %v1380_v56, %v1306_v51  ;;  %v2165_v62 = vpop.f32.mrb[25].mxu0  ;;  %v1999_v51 = vld [vmem:[%s3007_s9] ss:$0 sm:$0xff] }
 0x2af   : > { %v1383_v6 = vpop.f32.mrb[26].mxu0  ;;  %v2257_v62 = vld [vmem:[%s3011_s13 + $0x40] sm:$0xff]  }
 0x2b0   : > { %v1384_v60 = vadd.f32 %v1383_v6, %v1309_v52  ;;  %v2166_v7 = vpop.f32.mrb[27].mxu0  ;;  %v2258_v6 = vld [vmem:[%s3011_s13] sm:$0xff]   ;;  %2069 = vmatprep.subr.bf16.mxu0 %v2257_v62 }
 0x2b1   : > { %v1462_v8 = vpop.f32.mrb[32].mxu1  ;;  %2070 = vmatpush3.bf16.msra.mxu0 %v2258_v6  ;;  %v2260_v7 = vld [vmem:[%s3011_s13 + $0x8] sm:$0xff]  }
 0x2b2   : > { %v1475_v9 = vadd.f32 %v1462_v8, %v1381_v3  ;;  %v2181_v12 = vpop.f32.mrb[33].mxu1  ;;  %v2363_v3 = vmov 0   ;;  %v2261_v8 = vld [vmem:[%s3011_s13 + $0x50] sm:$0xff]  }
 0x2b3   : > { %v1465_v14 = vpop.f32.mrb[34].mxu1  ;;  %2240 = vset.pattern.permute.xlu0 %v2363_v3  ;;  %2241 = vset.pattern.permute.xlu1 %v2363_v3  ;;  %v2264_v12 = vld [vmem:[%s3011_s13 + $0x18] sm:$0xff]  }
 0x2b4   : > { %v1484_v15 = vadd.f32 %v1998_v1, %v1475_v9  ;;  %v1476_v16 = vadd.f32 %v1465_v14, %v1384_v60  ;;  %v2182_v20 = vpop.f32.mrb[35].mxu1  ;;  %v2259_v60 = vld [vmem:[%s3011_s13 + $0x48] sm:$0xff]   ;;  %v2263_v9 = vld [vmem:[%s3011_s13 + $0x58] sm:$0xff]   ;;  %v2265_v14 = vld [vmem:[%s3011_s13 + $0x60] sm:$0xff]  }
 0x2b5   : > { %v1388_v17 = vpop.f32.mrb[28].mxu0  ;;  %2071 = vmatprep.subr.bf16.mxu0 %v2259_v60  ;;  %v2268_v20 = vld [vmem:[%s3011_s13 + $0x28] sm:$0xff]  }
 0x2b6   : > { %v1485_v18 = vadd.f32 %v1998_v1, %v1476_v16  ;;  %v2169_v19 = vpop.f32.mrb[29].mxu0  ;;  %v1486_v22 = vsel %vm815_vm1, %v1484_v15, 0.0  ;;  %v1494_v24 = vmul.f32 %v1484_v15, %v1484_v15  ;;  %2072 = vmatpush3.bf16.msra.mxu0 %v2260_v7  ;;  %v2262_v1 = vld [vmem:[%s3011_s13 + $0x10] sm:$0xff]   ;;  %v2267_v16 = vld [vmem:[%s3011_s13 + $0x68] sm:$0xff]  }
 0x2b7   : > { %v1390_v28 = vpop.f32.mrb[30].mxu0  ;;  %1487 = vadd.xlane.f32.xlu0 %v1486_v22  ;;  %2073 = vmatprep.subr.bf16.mxu0 %v2261_v8  ;;  %v2269_v17 = vld [vmem:[%s3011_s13 + $0x70] sm:$0xff]   ;;  %v2002_v19 = vld [vmem:[#allocation2] ss:$0 sm:$0xff] }
 0x2b8   : > { %v2170_v29 = vpop.f32.mrb[31].mxu0  ;;  %v1489_v31 = vsel %vm815_vm1, %v1485_v18, 0.0  ;;  %v1495_v34 = vmul.f32 %v1485_v18, %v1485_v18  ;;  %v1496_v10 = vsel %vm815_vm1, %v1494_v24, 0.0 }
 0x2b9   : > { %1490 = vadd.xlane.f32.xlu1 %v1489_v31  ;;  %v1470_v11 = vpop.f32.mrb[36].mxu1 }
 0x2ba   : > { %v2185_v35 = vpop.f32.mrb[37].mxu1  ;;  %v1499_v21 = vsel %vm815_vm1, %v1495_v34, 0.0  ;;  %2074 = vmatpush3.bf16.msra.mxu0 %v2262_v1 }
 0x2bb   : > { %1497 = vadd.xlane.f32.xlu0 %v1496_v10  ;;  %v1472_v26 = vpop.f32.mrb[38].mxu1  ;;  %2075 = vmatprep.subr.bf16.mxu0 %v2263_v9 }
 0x2bc   : > { %v2186_v13 = vpop.f32.mrb[39].mxu1 }
 0x2bd   : > { %1500 = vadd.xlane.f32.xlu1 %v1499_v21 }
 0x2be   : > { %2076 = vmatpush3.bf16.msra.mxu0 %v2264_v12 }
 0x2bf   : > { %2077 = vmatprep.subr.bf16.mxu0 %v2265_v14 }
 0x344   : > { %v1488_v23 = vpop.xlane.xlu0 %1487 }
 0x345   : > { %v1492_v32 = vmul.f32 0.03125, %v1488_v23 }
 0x346   : > { %v1491_v38 = vpop.xlane.xlu1 %1490 }
 0x347   : > { %v1493_v39 = vmul.f32 0.03125, %v1491_v38  ;;  %v1504_v42 = vmul.f32 %v1492_v32, %v1492_v32  ;;  %v1510_v48 = vsub.f32 %v1484_v15, %v1492_v32  ;;  %v2266_v15 = vld [vmem:[%s3011_s13 + $0x20] sm:$0xff]  }
 0x348   : > { %v1498_v41 = vpop.xlane.xlu0 %1497  ;;  %2078 = vmatpush3.bf16.msra.mxu0 %v2266_v15 }
 0x349   : > { %v1502_v33 = vmul.f32 0.03125, %v1498_v41  ;;  %v1505_v46 = vmul.f32 %v1493_v39, %v1493_v39  ;;  %v1511_v27 = vsub.f32 %v1485_v18, %v1493_v39  ;;  %2079 = vmatprep.subr.bf16.mxu0 %v2267_v16  ;;  %v2270_v18 = vld [vmem:[%s3011_s13 + $0x30] sm:$0xff]  }
 0x34a   : > { %v1501_v36 = vpop.xlane.xlu1 %1500 }
 0x34b   : > { %v1506_v30 = vsub.f32 %v1502_v33, %v1504_v42  ;;  %v1503_v37 = vmul.f32 0.03125, %v1501_v36 }
 0x34c   : > { %2080 = vmatpush3.bf16.msra.mxu0 %v2268_v20 }
 0x34d   : > { %v1508_v44 = vmax.f32 %v1506_v30, 0.0  ;;  %v1507_v40 = vsub.f32 %v1503_v37, %v1505_v46  ;;  %2081 = vmatprep.subr.bf16.mxu0 %v2269_v17 }
 0x34f   : > { %v1512_v47 = vadd.f32 1e-05, %v1508_v44  ;;  %v1509_v5 = vmax.f32 %v1507_v40, 0.0 }
 0x350   : > { %2082 = vmatpush3.bf16.msra.mxu0 %v2270_v18 }
 0x351   : > { %2285 = vrsqrt.f32 %v1512_v47  ;;  %v1513_v43 = vadd.f32 1e-05, %v1509_v5  ;;  %v2271_v5 = vld [vmem:[%s3011_s13 + $0x78] sm:$0xff]  }
 0x352   : > { %2083 = vmatprep.subr.bf16.mxu0 %v2271_v5 }
 0x353   : > { %2287 = vrsqrt.f32 %v1513_v43  ;;  %v2272_v43 = vld [vmem:[%s3011_s13 + $0x38] sm:$0xff]  }
 0x354   : > { %2084 = vmatpush3.bf16.msra.mxu0 %v2272_v43 }
 0x35b   : > { %v2286_v50 = vpop.eup %2285 }
 0x35c   : > { %v1516_v52 = vmul.f32 %v2286_v50, %v1510_v48  ;;  %v1586_v48 = vand.u32 127, %v625_v4 }
 0x35d   : > { %v2288_v2 = vpop.eup %2287 }
 0x35e   : > { %v1525_v25 = vmul.f32 %v1999_v51, %v1516_v52  ;;  %v1517_v45 = vmul.f32 %v2288_v2, %v1511_v27  ;;  %v1587_v50 = vadd.s32 128, %v1586_v48  ;;  %v2364_v52 = vmov 1.0|1.0  }
 0x360   : > { %v1534_v54 = vadd.f32 %v2000_v53, %v1525_v25  ;;  %v1526_v57 = vmul.f32 %v1999_v51, %v1517_v45 }
 0x362   : > { %v1536_v58 = vmax.f32 %v1534_v54, 0.0  ;;  %v1535_v59 = vadd.f32 %v2000_v53, %v1526_v57 }
 0x364   : > { %v1545_v61 = vmul.f32 %v2001_v49, %v1536_v58  ;;  %v1537_v0 = vmax.f32 %v1535_v59, 0.0 }
 0x366   : > { %v1547_v55 = vsel %vm815_vm1, %v1545_v61, 0.0  ;;  %v1546_v63 = vmul.f32 %v2001_v49, %v1537_v0 }
 0x367   : > { %1548 = vadd.xlane.f32.xlu0 %v1547_v55 }
 0x368   : > { %v1550_v56 = vsel %vm815_vm1, %v1546_v63, 0.0 }
 0x369   : > { %1551 = vadd.xlane.f32.xlu1 %v1550_v56 }
 0x3f4   : > { %v1549_v22 = vpop.xlane.xlu0 %1548 }
 0x3f5   : > { %v1560_v24 = vadd.f32 %v2002_v19, %v1549_v22 }
 0x3f6   : > { %v1552_v28 = vpop.xlane.xlu1 %1551 }
 0x3f7   : > { %v1562_v29 = vmax.f32 %v1560_v24, 0.0  ;;  %v1561_v31 = vadd.f32 %v2002_v19, %v1552_v28 }
 0x3f9   : > { %1565 = vst.msk [vmem:[%s595_s21] sm:$0xff] %vm1564_vm0, %v1562_v29  ;;  %v1567_v34 = vmul.f32 1.442695, %v1562_v29  ;;  %v1563_v11 = vmax.f32 %v1561_v31, 0.0 }
 0x3fb   : > { %2289 = vpow2.f32 %v1567_v34  ;;  %1566 = vst.msk [vmem:[%s595_s21 + $0x8] sm:$0xff] %vm1564_vm0, %v1563_v11  ;;  %v1569_v35 = vmul.f32 1.442695, %v1563_v11  ;;  %s2955_s21 = scalar_lea.hbm %s3042_s23, %s2038_s22 }
 0x3fd   : > { %2291 = vpow2.f32 %v1569_v35 }
 0x405   : > { %v2290_v10 = vpop.eup %2289 }
 0x406   : > { %v2003_v26 = vadd.f32 -1.0, %v2290_v10 }
 0x407   : > { %v2292_v13 = vpop.eup %2291 }
 0x408   : > { %v1573_v21 = vadd.f32 1.0, %v2003_v26  ;;  %v2004_v23 = vadd.f32 -1.0, %v2292_v13 }
 0x40a   : > { %2293 = vlog2.f32 %v1573_v21  ;;  %v1574_v32 = vadd.f32 1.0, %v2004_v23 }
 0x40c   : > { %2295 = vlog2.f32 %v1574_v32 }
 0x414   : > { %v2294_v38 = vpop.eup %2293 }
 0x415   : > { %v1576_v39 = vmul.f32 0.6931472, %v2294_v38 }
 0x416   : > { %v2296_v41 = vpop.eup %2295 }
 0x417   : > { %v1579_v42 = vmax.f32 %v1576_v39, 0.0  ;;  %v1578_v33 = vmul.f32 0.6931472, %v2296_v41 }
 0x419   : > { %v1581_v36 = vmin.f32 %v1579_v42, 255.0  ;;  %v1580_v46 = vmax.f32 %v1578_v33, 0.0 }
 0x41b   : > { %v2191_v30 = vtrunc.f32 %v1581_v36  ;;  %v1582_v37 = vmin.f32 %v1580_v46, 255.0 }
 0x41d   : > { %v2192_v44 = vcvt.f32.s32 %v2191_v30  ;;  %v2193_v40 = vtrunc.f32 %v1582_v37 }
 0x41f   : > { %1589 = vperm.xlu0 %2240, %v2192_v44   ;;  %v2194_v47 = vcvt.f32.s32 %v2193_v40 }
 0x421   : > { %1592 = vperm.xlu1 %2241, %v2194_v47  }
 0x49e   : > { %v1590_v51 = vpop.permute.xlu0 %1589 }
 0x49f   : > { %vm1595_vm1 = vcmp.eq.s32.totalorder %v1587_v50, %v1590_v51  ;;  %vm1594_vm4 = vcmp.eq.s32.totalorder %v1586_v48, %v1590_v51 }
 0x4a0   : > { %v1593_v27 = vpop.permute.xlu1 %1592 }
 0x4a1   : > { %vm1596_vm2 = vcmp.eq.s32.totalorder %v1586_v48, %v1593_v27  ;;  %vm1597_vm3 = vcmp.eq.s32.totalorder %v1587_v50, %v1593_v27 }
 0x4a2   : > { %vm2025_vm5 = vmpackc.low %vm1597_vm3, %vm1595_vm1 }
 0x4a3   : > { %vm2027_vm8 = vmpackc.low %vm1596_vm2, %vm1594_vm4  ;;  %2026 = vmatprep.mubr.msk.bf16.mxu0 %vm2025_vm5, %v2364_v52 }
 0x4a4   : > { %2028 = vmatmul.mubr.msk.bf16.vlgmr.msra.gmra.mrb[32].mxu0 %vm2027_vm8, %v2364_v52 }
 0x577   : > { %v2085_v2 = vpop.f32.mrb[32].mxu0 }
 0x578   : > { %v2086_v53 = vpop.f32.mrb[33].mxu0 }
 0x579   : > { %v2087_v25 = vadd.f32 %v2086_v53, %v2085_v2  ;;  %v2088_v4 = vpop.f32.mrb[34].mxu0 }
 0x57a   : > { %v2089_v45 = vpop.f32.mrb[35].mxu0 }
 0x57b   : > { %v2036_v54 = vpack.c.bf16 %v2087_v25, %v2087_v25  ;;  %v2090_v57 = vadd.f32 %v2089_v45, %v2088_v4 }
 0x57d   : > { %1786 = vst.msk [vmem:[%s560_s26] sm:$0xf] %vm1785_vm7, %v2036_v54  ;;  %v2037_v49 = vpack.c.bf16 %v2090_v57, %v2090_v57 }
 0x57f   : > { %1787 = vst.msk [vmem:[%s560_s26 + $0x4] sm:$0xf] %vm1785_vm7, %v2037_v49 }
 0x580   : > { %2310 = shalt.err (!%p2307_p9)
}
 0x581   : > { %s2311_s27 = scalar_lea.hbm %s2955_s21, 128  ;;  %s2315_s26 = scalar_lea.hbm %s3043_s15, 256 }
 0x582   : > { %p2312_p10 = scmp.ne.s32.totalorder %s2955_s21, %s2311_s27  ;;  %p2316_p13 = scmp.lt.u32.totalorder %s2955_s21, %s3043_s15 }
 0x583   : > { %p2317_p0 = scmp.lt.u32.totalorder %s2315_s26, %s2311_s27  ;;  %p2319_p2 = scmp.lt.u32.totalorder %s2311_s27, %s2955_s21 }
 0x584   : > { %p2313_p11 = pnand %p2312_p10, %p2489_p5 }
 0x585   : > { %p2318_p1 = por %p2317_p0, %p2316_p13 }
 0x586   : > { %p2314_p12 = pneg %p2313_p11 }
 0x587   : > { %p2320_p3 = por %p2319_p2, %p2318_p1 }
 0x589   : > { %p2321_p4 = pnand %p2320_p3, %p2314_p12 }
 0x58b   : > { %2324 = shalt.err (!%p2321_p4)
}
 0x58c   : > { %s2366_s20 = smov 64   ;;  %s2367_s23 = smov 4  }
 0x58d   : > { %2195 = dma.vmem_to_hbm [thread:$0]  (%p2489_p5), %s2950_s24, 128, %s2955_s21, %s2957_s16, %s2366_s20, %s2366_s20, %s2367_s23  }
 0x58e PF: > { %s3044_s25 = sld [smem:[#allocation9_spill]]  ;;  %s3045_s12 = sld [smem:[#allocation6_spill]] }
 0x594   : > { %p2201_p7 = scmp.ge.s32.totalorder %s3044_s25, 2  ;;  %s1834_s30 = sand.u32 1, %s3045_s12  }
 0x595   : > { %s1835_s27 = scalar_lea.sflag [#allocation4], %s1834_s30 }
 0x596   : > { %p2198_p8 = pnand %p2201_p7, %p2493_p6 }
 0x598   : > { %2342 = dma.done.wait (!%p2198_p8), %s1835_s27, 128  }
 0x599   : > { %2344 = vsyncadd (!%p2198_p8), %s1835_s27, 4294967168  ;;  %s3047_s23 = sld [smem:[#allocation10_spill]]  ;;  %s3048_s20 = sld [smem:[#allocation7_spill]] }
 0x59a   : > { %s3049_s21 = sld [smem:[#allocation8_spill]]  ;;  %s3050_s22 = sld [smem:[#allocation11_spill]] }
 0x59f   : > { %p28_p9 = scmp.ge.s32.totalorder %s3047_s23, 4  }
 0x5a1   :  { %30 = sbr.rel (!%p28_p9) target bundleno = 6 (0x6), region = 133 }
 0x5a8   :  { %1840 = vsyncpa [#allocation4], 1 }
 0x5a9   :  { %1842 = vsyncpa [#allocation4 + $0x1], 1 }

</bundles_post_ra>
